<compile_context>
chip_gen: v5e
topology: v5e:2x2
jax: 0.10.0
libtpu: 0.0.40
codegen_flags: <defaults>
</compile_context>

<pallas_src>
import math
import numpy as np

import jax
import jax.numpy as jnp
from jax.experimental import pallas as pl
from jax.experimental.pallas import tpu as pltpu

FS = 44100
RESAMPLING_FACTOR = 32
TWO_PI = 2.0 * math.pi
INV_TWO_PI = 1.0 / TWO_PI


# ----------------------------------------------------------------------------
# Static interpolation weight matrices (built once per tile configuration)
# ----------------------------------------------------------------------------
def _lerp_tap_weights(r):
    """Per-sample lerp weights onto frames (g-1, g, g+1) for one r-sample group
    (PyTorch F.interpolate 'linear', align_corners=False)."""
    j = np.arange(r, dtype=np.float64)
    pos = (j + 0.5) / r - 0.5          # source offset relative to current frame g
    w_prev = np.where(pos < 0, -pos, 0.0)
    w_curr = 1.0 - np.abs(pos)
    w_next = np.where(pos >= 0, pos, 0.0)
    return np.stack([w_prev, w_curr, w_next], axis=0)          # [3, r]


def _tile_weight_matrices(tile_f, r, fs):
    """[3, tile_F, tile_T] plain lerp weights (amplitude path) and cumulative
    lerp weights scaled by 2*pi/fs (phase path)."""
    taps = _lerp_tap_weights(r)                                # [3, r]
    tile_t = tile_f * r
    w = np.zeros((3, tile_f, tile_t), dtype=np.float64)
    for g in range(tile_f):
        w[:, g, g * r:(g + 1) * r] = taps
    cw = np.cumsum(w, axis=-1) * (TWO_PI / fs)                 # cumsum over local time
    return (jnp.asarray(w, dtype=jnp.float32),
            jnp.asarray(cw, dtype=jnp.float32))


# ----------------------------------------------------------------------------
# Pallas kernel: one (batch, time-tile) grid step
# ----------------------------------------------------------------------------
def _sine_synth_kernel(f3_ref, a3_ref, cw_ref, w_ref, out_ref, carry_ref):
    # carry_ref: [n_sines, 1] running phase (mod 2*pi) at the start of this tile.
    @pl.when(pl.program_id(1) == 0)
    def _init():
        carry_ref[...] = jnp.zeros_like(carry_ref)

    def expand(x_ref, wt_ref):
        # x_ref block: [1, 3, 1, S, tile_F]; wt_ref: [3, tile_F, tile_T] -> [S, tile_T]
        acc = jnp.dot(x_ref[0, 0, 0], wt_ref[0],
                      preferred_element_type=jnp.float32,
                      precision=jax.lax.Precision.HIGHEST)
        acc = acc + jnp.dot(x_ref[0, 1, 0], wt_ref[1],
                            preferred_element_type=jnp.float32,
                            precision=jax.lax.Precision.HIGHEST)
        acc = acc + jnp.dot(x_ref[0, 2, 0], wt_ref[2],
                            preferred_element_type=jnp.float32,
                            precision=jax.lax.Precision.HIGHEST)
        return acc

    # Fused upsample + within-tile cumulative phase (MXU), plus running carry.
    phase = carry_ref[...] + expand(f3_ref, cw_ref)            # [S, tile_T]
    amp = expand(a3_ref, w_ref)                                # [S, tile_T]

    wrapped = phase - TWO_PI * jnp.floor(phase * INV_TWO_PI)   # mod 2*pi, no divide
    out_ref[0] = jnp.sum(amp * jnp.sin(wrapped), axis=0, keepdims=True)

    # Phase of the last sample (already wrapped) carries into the next tile.
    carry_ref[...] = wrapped[:, -1:]


# ----------------------------------------------------------------------------
# Wrapper
# ----------------------------------------------------------------------------
def _pick_tile_frames(n_frames, r, target_samples=4096):
    best = None
    max_tf = max(1, target_samples // r)
    for tf in range(1, n_frames + 1):
        if tf > max_tf:
            break
        if n_frames % tf == 0 and (tf * r) % 128 == 0:
            best = tf
    return best if best is not None else n_frames


def sine_synth_forward(frequencies, amplitudes, *, fs=FS,
                       resampling_factor=RESAMPLING_FACTOR, tile_frames=None):
    """frequencies, amplitudes: [B, n_sines, n_frames] -> [B, 1, n_frames * r]."""
    # TODO(synk): streaming mode (stateful self._phases carry across calls) is not
    # implemented; this matches the default streaming=False forward pass.
    frequencies = jnp.asarray(frequencies, jnp.float32)
    amplitudes = jnp.asarray(amplitudes, jnp.float32)
    b, n_sines, n_frames = frequencies.shape
    r = int(resampling_factor)
    t_total = n_frames * r

    if tile_frames is None:
        tile_frames = _pick_tile_frames(n_frames, r)
    assert n_frames % tile_frames == 0
    assert (tile_frames * r) % 128 == 0 or tile_frames == n_frames
    n_tiles = n_frames // tile_frames
    tile_t = tile_frames * r

    def frame_views(x):
        # prev / curr / next frame views, edge-clamped (matches align_corners=False
        # boundary behavior exactly since the three weights always sum to 1).
        xp = jnp.concatenate([x[..., :1], x[..., :-1]], axis=-1)
        xn = jnp.concatenate([x[..., 1:], x[..., -1:]], axis=-1)
        x3 = jnp.stack([xp, x, xn], axis=1)                        # [B, 3, S, F]
        x3 = x3.reshape(b, 3, n_sines, n_tiles, tile_frames)
        return jnp.transpose(x3, (0, 1, 3, 2, 4))                  # [B, 3, n_tiles, S, tile_F]

    f3 = frame_views(frequencies)
    a3 = frame_views(amplitudes)
    w_lin, w_cum = _tile_weight_matrices(tile_frames, r, fs)

    return pl.pallas_call(
        _sine_synth_kernel,
        out_shape=jax.ShapeDtypeStruct((b, 1, t_total), jnp.float32),
        grid=(b, n_tiles),
        in_specs=[
            pl.BlockSpec((1, 3, 1, n_sines, tile_frames),
                         lambda bi, ti: (bi, 0, ti, 0, 0)),
            pl.BlockSpec((1, 3, 1, n_sines, tile_frames),
                         lambda bi, ti: (bi, 0, ti, 0, 0)),
            pl.BlockSpec((3, tile_frames, tile_t), lambda bi, ti: (0, 0, 0)),
            pl.BlockSpec((3, tile_frames, tile_t), lambda bi, ti: (0, 0, 0)),
        ],
        out_specs=pl.BlockSpec((1, 1, tile_t), lambda bi, ti: (bi, 0, ti)),
        scratch_shapes=[pltpu.VMEM((n_sines, 1), jnp.float32)],
        compiler_params=pltpu.CompilerParams(
            dimension_semantics=("parallel", "arbitrary")),
    )(f3, a3, w_cum, w_lin)


# ----------------------------------------------------------------------------
# Pure-JAX reference (mirrors the PyTorch forward) for the correctness check
# ----------------------------------------------------------------------------
def linear_upsample(x, r):
    """PyTorch F.interpolate(mode='linear', align_corners=False), channels-first."""
    _, _, f_in = x.shape
    t = f_in * r
    j = jnp.arange(t, dtype=jnp.float32)
    src = jnp.maximum((j + 0.5) / float(r) - 0.5, 0.0)
    i0 = jnp.minimum(jnp.floor(src).astype(jnp.int32), f_in - 1)
    i1 = jnp.minimum(i0 + 1, f_in - 1)
    w1 = src - i0.astype(jnp.float32)
    w0 = 1.0 - w1
    return w0 * jnp.take(x, i0, axis=-1) + w1 * jnp.take(x, i1, axis=-1)


def sine_synth_reference(frequencies, amplitudes, *, fs=FS,
                         resampling_factor=RESAMPLING_FACTOR):
    f = linear_upsample(frequencies, resampling_factor)
    a = linear_upsample(amplitudes, resampling_factor)
    omega = f * TWO_PI / fs
    phases = jnp.cumsum(omega, axis=-1)
    phases = phases - TWO_PI * jnp.floor(phases * INV_TWO_PI)
    return jnp.sum(a * jnp.sin(phases), axis=1, keepdims=True)


if __name__ == "__main__":
    # Small shapes: batch=2, n_sines=8, n_frames=32, r=32 -> 1024 samples.
    # tile_frames=8 -> tile_T=256 lanes, 4 time tiles per batch (exercises the
    # cross-tile phase carry and the batch-parallel grid axis).
    batch, n_sines, n_frames, r = 2, 8, 32, 32

    key = jax.random.PRNGKey(0)
    kf, ka = jax.random.split(key)
    frequencies = jax.random.uniform(kf, (batch, n_sines, n_frames), jnp.float32) * 2000.0 + 40.0
    amplitudes = jax.random.uniform(ka, (batch, n_sines, n_frames), jnp.float32) / n_sines

    out = sine_synth_forward(frequencies, amplitudes, resampling_factor=r, tile_frames=8)
    out = jax.block_until_ready(out)

    ref = jax.block_until_ready(
        sine_synth_reference(frequencies, amplitudes, resampling_factor=r))

    assert out.shape == (batch, 1, n_frames * r), out.shape
    max_err = float(jnp.max(jnp.abs(out - ref)))
    assert jnp.allclose(out, ref, atol=2e-3, rtol=2e-3), max_err

    print("KERNEL_OK")
</pallas_src>

<mosaic_0001>
module attributes {stable_mosaic.version = 11 : i64} {
  func.func @_sine_synth_kernel(%arg0: i32, %arg1: i32, %arg2: memref<1x3x1x8x8xf32, #tpu.memory_space<vmem>>, %arg3: memref<1x3x1x8x8xf32, #tpu.memory_space<vmem>>, %arg4: memref<3x8x256xf32, #tpu.memory_space<vmem>>, %arg5: memref<3x8x256xf32, #tpu.memory_space<vmem>>, %arg6: memref<1x1x256xf32, #tpu.memory_space<vmem>>, %arg7: memref<8x1xf32, #tpu.memory_space<vmem>>) attributes {dimension_semantics = [#tpu.dimension_semantics<parallel>, #tpu.dimension_semantics<arbitrary>], iteration_bounds = array<i64: 2, 4>, scalar_prefetch = 0 : i64, scratch_operands = 1 : i64, tpu.core_type = #tpu.core_type<tc>, window_params = [{transform_indices = @transform_0, window_bounds = array<i64: 1, 3, 1, 8, 8>}, {transform_indices = @transform_1, window_bounds = array<i64: 1, 3, 1, 8, 8>}, {pipeline_mode = #tpu.pipeline_mode<synchronous>, transform_indices = @transform_2, window_bounds = array<i64: 3, 8, 256>}, {pipeline_mode = #tpu.pipeline_mode<synchronous>, transform_indices = @transform_3, window_bounds = array<i64: 3, 8, 256>}, {transform_indices = @transform_4, window_bounds = array<i64: 1, 1, 256>}]} {
    %c0_i32 = arith.constant 0 : i32
    %0 = arith.cmpi eq, %arg1, %c0_i32 : i32
    %1 = arith.extui %0 : i1 to i32
    %c0_i32_0 = arith.constant 0 : i32
    %2 = arith.cmpi ne, %1, %c0_i32_0 : i32
    scf.if %2 {
      %cst_61 = arith.constant 0.000000e+00 : f32
      %55 = vector.broadcast %cst_61 : f32 to vector<8x1xf32>
      %c0_62 = arith.constant 0 : index
      %c0_63 = arith.constant 0 : index
      %56 = vector.load %arg7[%c0_62, %c0_63] : memref<8x1xf32, #tpu.memory_space<vmem>>, vector<8x1xf32>
      tpu.vector_store %arg7[%c0_62, %c0_63], %55 {strides = array<i32>} : memref<8x1xf32, #tpu.memory_space<vmem>>, vector<8x1xf32>,
    } else {
    }
    %c0 = arith.constant 0 : index
    %c0_1 = arith.constant 0 : index
    %3 = vector.load %arg7[%c0, %c0_1] : memref<8x1xf32, #tpu.memory_space<vmem>>, vector<8x1xf32>
    %c0_2 = arith.constant 0 : index
    %c0_3 = arith.constant 0 : index
    %c0_4 = arith.constant 0 : index
    %c0_5 = arith.constant 0 : index
    %c0_6 = arith.constant 0 : index
    %4 = vector.load %arg2[%c0_2, %c0_3, %c0_4, %c0_5, %c0_6] : memref<1x3x1x8x8xf32, #tpu.memory_space<vmem>>, vector<1x1x1x8x8xf32>
    %5 = vector.shape_cast %4 : vector<1x1x1x8x8xf32> to vector<8x8xf32>
    %c0_7 = arith.constant 0 : index
    %c0_8 = arith.constant 0 : index
    %c0_9 = arith.constant 0 : index
    %6 = vector.load %arg4[%c0_7, %c0_8, %c0_9] : memref<3x8x256xf32, #tpu.memory_space<vmem>>, vector<1x8x256xf32>
    %7 = vector.shape_cast %6 : vector<1x8x256xf32> to vector<8x256xf32>
    %cst = arith.constant dense<0.000000e+00> : vector<8x256xf32>
    %8 = tpu.matmul %5, %7, %cst {dimension_numbers = #tpu.dot_dimension_numbers<[1], [0], [0], [1], [0, 0, 1, 1], [], []>, precision = #tpu.contract_precision<fp32>} : vector<8x8xf32>, vector<8x256xf32>, vector<8x256xf32> -> vector<8x256xf32>
    %c0_10 = arith.constant 0 : index
    %c1 = arith.constant 1 : index
    %c0_11 = arith.constant 0 : index
    %c0_12 = arith.constant 0 : index
    %c0_13 = arith.constant 0 : index
    %9 = vector.load %arg2[%c0_10, %c1, %c0_11, %c0_12, %c0_13] : memref<1x3x1x8x8xf32, #tpu.memory_space<vmem>>, vector<1x1x1x8x8xf32>
    %10 = vector.shape_cast %9 : vector<1x1x1x8x8xf32> to vector<8x8xf32>
    %c1_14 = arith.constant 1 : index
    %c0_15 = arith.constant 0 : index
    %c0_16 = arith.constant 0 : index
    %11 = vector.load %arg4[%c1_14, %c0_15, %c0_16] : memref<3x8x256xf32, #tpu.memory_space<vmem>>, vector<1x8x256xf32>
    %12 = vector.shape_cast %11 : vector<1x8x256xf32> to vector<8x256xf32>
    %cst_17 = arith.constant dense<0.000000e+00> : vector<8x256xf32>
    %13 = tpu.matmul %10, %12, %cst_17 {dimension_numbers = #tpu.dot_dimension_numbers<[1], [0], [0], [1], [0, 0, 1, 1], [], []>, precision = #tpu.contract_precision<fp32>} : vector<8x8xf32>, vector<8x256xf32>, vector<8x256xf32> -> vector<8x256xf32>
    %14 = arith.addf %8, %13 : vector<8x256xf32>
    %c0_18 = arith.constant 0 : index
    %c2 = arith.constant 2 : index
    %c0_19 = arith.constant 0 : index
    %c0_20 = arith.constant 0 : index
    %c0_21 = arith.constant 0 : index
    %15 = vector.load %arg2[%c0_18, %c2, %c0_19, %c0_20, %c0_21] : memref<1x3x1x8x8xf32, #tpu.memory_space<vmem>>, vector<1x1x1x8x8xf32>
    %16 = vector.shape_cast %15 : vector<1x1x1x8x8xf32> to vector<8x8xf32>
    %c2_22 = arith.constant 2 : index
    %c0_23 = arith.constant 0 : index
    %c0_24 = arith.constant 0 : index
    %17 = vector.load %arg4[%c2_22, %c0_23, %c0_24] : memref<3x8x256xf32, #tpu.memory_space<vmem>>, vector<1x8x256xf32>
    %18 = vector.shape_cast %17 : vector<1x8x256xf32> to vector<8x256xf32>
    %cst_25 = arith.constant dense<0.000000e+00> : vector<8x256xf32>
    %19 = tpu.matmul %16, %18, %cst_25 {dimension_numbers = #tpu.dot_dimension_numbers<[1], [0], [0], [1], [0, 0, 1, 1], [], []>, precision = #tpu.contract_precision<fp32>} : vector<8x8xf32>, vector<8x256xf32>, vector<8x256xf32> -> vector<8x256xf32>
    %20 = arith.addf %14, %19 : vector<8x256xf32>
    %21 = vector.broadcast %3 : vector<8x1xf32> to vector<8x256xf32>
    %22 = arith.addf %21, %20 : vector<8x256xf32>
    %c0_26 = arith.constant 0 : index
    %c0_27 = arith.constant 0 : index
    %c0_28 = arith.constant 0 : index
    %c0_29 = arith.constant 0 : index
    %c0_30 = arith.constant 0 : index
    %23 = vector.load %arg3[%c0_26, %c0_27, %c0_28, %c0_29, %c0_30] : memref<1x3x1x8x8xf32, #tpu.memory_space<vmem>>, vector<1x1x1x8x8xf32>
    %24 = vector.shape_cast %23 : vector<1x1x1x8x8xf32> to vector<8x8xf32>
    %c0_31 = arith.constant 0 : index
    %c0_32 = arith.constant 0 : index
    %c0_33 = arith.constant 0 : index
    %25 = vector.load %arg5[%c0_31, %c0_32, %c0_33] : memref<3x8x256xf32, #tpu.memory_space<vmem>>, vector<1x8x256xf32>
    %26 = vector.shape_cast %25 : vector<1x8x256xf32> to vector<8x256xf32>
    %cst_34 = arith.constant dense<0.000000e+00> : vector<8x256xf32>
    %27 = tpu.matmul %24, %26, %cst_34 {dimension_numbers = #tpu.dot_dimension_numbers<[1], [0], [0], [1], [0, 0, 1, 1], [], []>, precision = #tpu.contract_precision<fp32>} : vector<8x8xf32>, vector<8x256xf32>, vector<8x256xf32> -> vector<8x256xf32>
    %c0_35 = arith.constant 0 : index
    %c1_36 = arith.constant 1 : index
    %c0_37 = arith.constant 0 : index
    %c0_38 = arith.constant 0 : index
    %c0_39 = arith.constant 0 : index
    %28 = vector.load %arg3[%c0_35, %c1_36, %c0_37, %c0_38, %c0_39] : memref<1x3x1x8x8xf32, #tpu.memory_space<vmem>>, vector<1x1x1x8x8xf32>
    %29 = vector.shape_cast %28 : vector<1x1x1x8x8xf32> to vector<8x8xf32>
    %c1_40 = arith.constant 1 : index
    %c0_41 = arith.constant 0 : index
    %c0_42 = arith.constant 0 : index
    %30 = vector.load %arg5[%c1_40, %c0_41, %c0_42] : memref<3x8x256xf32, #tpu.memory_space<vmem>>, vector<1x8x256xf32>
    %31 = vector.shape_cast %30 : vector<1x8x256xf32> to vector<8x256xf32>
    %cst_43 = arith.constant dense<0.000000e+00> : vector<8x256xf32>
    %32 = tpu.matmul %29, %31, %cst_43 {dimension_numbers = #tpu.dot_dimension_numbers<[1], [0], [0], [1], [0, 0, 1, 1], [], []>, precision = #tpu.contract_precision<fp32>} : vector<8x8xf32>, vector<8x256xf32>, vector<8x256xf32> -> vector<8x256xf32>
    %33 = arith.addf %27, %32 : vector<8x256xf32>
    %c0_44 = arith.constant 0 : index
    %c2_45 = arith.constant 2 : index
    %c0_46 = arith.constant 0 : index
    %c0_47 = arith.constant 0 : index
    %c0_48 = arith.constant 0 : index
    %34 = vector.load %arg3[%c0_44, %c2_45, %c0_46, %c0_47, %c0_48] : memref<1x3x1x8x8xf32, #tpu.memory_space<vmem>>, vector<1x1x1x8x8xf32>
    %35 = vector.shape_cast %34 : vector<1x1x1x8x8xf32> to vector<8x8xf32>
    %c2_49 = arith.constant 2 : index
    %c0_50 = arith.constant 0 : index
    %c0_51 = arith.constant 0 : index
    %36 = vector.load %arg5[%c2_49, %c0_50, %c0_51] : memref<3x8x256xf32, #tpu.memory_space<vmem>>, vector<1x8x256xf32>
    %37 = vector.shape_cast %36 : vector<1x8x256xf32> to vector<8x256xf32>
    %cst_52 = arith.constant dense<0.000000e+00> : vector<8x256xf32>
    %38 = tpu.matmul %35, %37, %cst_52 {dimension_numbers = #tpu.dot_dimension_numbers<[1], [0], [0], [1], [0, 0, 1, 1], [], []>, precision = #tpu.contract_precision<fp32>} : vector<8x8xf32>, vector<8x256xf32>, vector<8x256xf32> -> vector<8x256xf32>
    %39 = arith.addf %33, %38 : vector<8x256xf32>
    %cst_53 = arith.constant 0.159154937 : f32
    %40 = vector.broadcast %cst_53 : f32 to vector<8x256xf32>
    %41 = arith.mulf %22, %40 : vector<8x256xf32>
    %42 = math.floor %41 : vector<8x256xf32>
    %cst_54 = arith.constant 6.28318548 : f32
    %43 = vector.broadcast %cst_54 : f32 to vector<8x256xf32>
    %44 = arith.mulf %43, %42 : vector<8x256xf32>
    %45 = arith.subf %22, %44 : vector<8x256xf32>
    %46 = math.sin %45 : vector<8x256xf32>
    %47 = arith.mulf %39, %46 : vector<8x256xf32>
    %cst_55 = arith.constant dense<0.000000e+00> : vector<256xf32>
    %48 = vector.multi_reduction <add>, %47, %cst_55 [0] : vector<8x256xf32> to vector<256xf32>
    %49 = vector.shape_cast %48 : vector<256xf32> to vector<1x256xf32>
    %c0_56 = arith.constant 0 : index
    %c0_57 = arith.constant 0 : index
    %c0_58 = arith.constant 0 : index
    %50 = vector.load %arg6[%c0_56, %c0_57, %c0_58] : memref<1x1x256xf32, #tpu.memory_space<vmem>>, vector<1x1x256xf32>
    %51 = vector.shape_cast %50 : vector<1x1x256xf32> to vector<1x256xf32>
    %52 = vector.shape_cast %49 : vector<1x256xf32> to vector<1x1x256xf32>
    tpu.vector_store %arg6[%c0_56, %c0_57, %c0_58], %52 {strides = array<i32>} : memref<1x1x256xf32, #tpu.memory_space<vmem>>, vector<1x1x256xf32>,
    %53 = vector.extract_strided_slice %45 {offsets = [0, 255], sizes = [8, 1], strides = [1, 1]} : vector<8x256xf32> to vector<8x1xf32>
    %c0_59 = arith.constant 0 : index
    %c0_60 = arith.constant 0 : index
    %54 = vector.load %arg7[%c0_59, %c0_60] : memref<8x1xf32, #tpu.memory_space<vmem>>, vector<8x1xf32>
    tpu.vector_store %arg7[%c0_59, %c0_60], %53 {strides = array<i32>} : memref<8x1xf32, #tpu.memory_space<vmem>>, vector<8x1xf32>,
    return
  }
  func.func @transform_0(%arg0: i32, %arg1: i32) -> (i32, i32, i32, i32, i32) {
    %c0_i32 = arith.constant 0 : i32
    %c0_i32_0 = arith.constant 0 : i32
    %c0_i32_1 = arith.constant 0 : i32
    %c0_i32_2 = arith.constant 0 : i32
    return %arg0, %c0_i32, %arg1, %c0_i32_0, %c0_i32_1 : i32, i32, i32, i32, i32
  }
  func.func @transform_1(%arg0: i32, %arg1: i32) -> (i32, i32, i32, i32, i32) {
    %c0_i32 = arith.constant 0 : i32
    %c0_i32_0 = arith.constant 0 : i32
    %c0_i32_1 = arith.constant 0 : i32
    %c0_i32_2 = arith.constant 0 : i32
    return %arg0, %c0_i32, %arg1, %c0_i32_0, %c0_i32_1 : i32, i32, i32, i32, i32
  }
  func.func @transform_2(%arg0: i32, %arg1: i32) -> (i32, i32, i32) {
    %c0_i32 = arith.constant 0 : i32
    %c0_i32_0 = arith.constant 0 : i32
    %c0_i32_1 = arith.constant 0 : i32
    %c0_i32_2 = arith.constant 0 : i32
    return %c0_i32, %c0_i32_0, %c0_i32_1 : i32, i32, i32
  }
  func.func @transform_3(%arg0: i32, %arg1: i32) -> (i32, i32, i32) {
    %c0_i32 = arith.constant 0 : i32
    %c0_i32_0 = arith.constant 0 : i32
    %c0_i32_1 = arith.constant 0 : i32
    %c0_i32_2 = arith.constant 0 : i32
    return %c0_i32, %c0_i32_0, %c0_i32_1 : i32, i32, i32
  }
  func.func @transform_4(%arg0: i32, %arg1: i32) -> (i32, i32, i32) {
    %c0_i32 = arith.constant 0 : i32
    %c0_i32_0 = arith.constant 0 : i32
    return %arg0, %c0_i32, %arg1 : i32, i32, i32
  }
}

</mosaic_0001>

<bundles_post_ra>
// kernel: tpu_custom_call.1
= control target key start
LH: loop header
LB: loop body
LE: loop exit
PB: predicated region body
PF: predicated region fallthrough
CT: control target
= control target key end

     0   :  { %s3531_s0 = inlined_call_operand.hbm [shape: f32[2,3,4,8,8], index: 0, kind: input, shape index: {}]   ;;  %s3532_s1 = inlined_call_operand.hbm [shape: f32[2,3,4,8,8], index: 1, kind: input, shape index: {}]   ;;  %s3533_s2 = inlined_call_operand.hbm [shape: f32[3,8,256], index: 2, kind: input, shape index: {}]   ;;  %s3534_s3 = inlined_call_operand.hbm [shape: f32[3,8,256], index: 3, kind: input, shape index: {}]   ;;  %s3535_s4 = inlined_call_operand.hbm [shape: f32[2,1,1024], index: 4, kind: output, shape index: {}]  }
   0x1   :  { %3542 = sst [smem:[#allocation22_spill]] %s3531_s0 }
   0x2   :  { %3543 = sst [smem:[#allocation23_spill]] %s3533_s2 }
   0x3   :  { %3544 = sst [smem:[#allocation24_spill]] %s3534_s3 }
   0x4   :  { %9 = vsyncpa [#allocation4], 0 }
   0x5   :  { %11 = vsyncpa [#allocation4 + $0x1], 0 }
   0x6   :  { %12 = vsyncpa [#allocation7], 0 }
   0x7   :  { %14 = vsyncpa [#allocation7 + $0x1], 0 }
   0x8   :  { %15 = vsyncpa [#allocation10], 0 }
   0x9   :  { %16 = vsyncpa [#allocation5], 0 }
   0xa   :  { %18 = vsyncpa [#allocation5 + $0x1], 0  ;;  %s3050_s15 = smov 0   ;;  %s3052_s16 = smov 0  }
   0xb   :  { %s3054_s17 = smov 0   ;;  %s3056_s18 = smov 0  }
   0xc   :  { %s3058_s19 = smov 0   ;;  %s3060_s20 = smov 0  }
   0xd   :  { %s3062_s21 = smov 0   ;;  %s3064_s22 = smov 0  }
   0xe LB: > { %3545 = sst [smem:[#allocation17_spill]] %s2979_s15  ;;  %s3091_s23 = sadd.s32 4294967295, %s3007_s22   ;;  %s3007_s22 = sphi %s3064_s22, %s24_s22   ;;  %s3003_s21 = sphi %s3062_s21, %s3574_s21   ;;  %s2999_s20 = sphi %s3060_s20, %s3573_s20   ;;  %s2995_s19 = sphi %s3058_s19, %s3572_s19   ;;  %s2991_s18 = sphi %s3056_s18, %s3571_s18   ;;  %s2987_s17 = sphi %s3054_s17, %s3570_s17   ;;  %s2983_s16 = sphi %s3052_s16, %s3569_s16   ;;  %s2979_s15 = sphi %s3050_s15, %s3568_s15  }
   0xf   : > { %s2626_s24 = sadd.s32 4294967294, %s3007_s22   ;;  %p58_p0 = scmp.ne.s32.totalorder %s2983_s16, %s2979_s15 }
  0x10   : > { %p59_p1 = scmp.eq.s32.totalorder %s3091_s23, 0  ;;  %p154_p2 = scmp.eq.s32.totalorder %s3091_s23, 7 }
  0x11   : > { %p160_p3 = scmp.eq.s32.totalorder %s2626_s24, 7  ;;  %p2627_p5 = scmp.ge.s32.totalorder %s3007_s22, 1 }
  0x12   : > { %p3100_p4 = por %p59_p1, %p58_p0  ;;  %p167_p7 = scmp.lt.s32.totalorder %s3007_s22, 9 }
  0x13   : > { %p3105_p6 = por %p160_p3, %p58_p0  ;;  %s3549_s2 = sld [smem:[#allocation23_spill]] }
  0x14   : > { %p3113_p8 = pnand %p2627_p5, %p167_p7  ;;  %s3009_s5 = smov [#allocation8]  }
  0x15   : > { %s3547_s26 = scalar_select %p3105_p6, 1, 0 }
  0x16   : > { %p2672_p9 = pneg %p3113_p8  ;;  %s180_s6 = sshll.u32 %s3009_s5, 4  ;;  %s181_s6 = int_to_ptr.vmem [resolvable:$true] %s180_s6 }
  0x17   : > { %3548 = sst [smem:[#allocation18_spill]] %s3547_s26  ;;  %s3010_s10 = smov 256  }
  0x18   : > { %p2673_p10 = pnand %p2672_p9, %p59_p1  ;;  %s3551_s3 = sld [smem:[#allocation24_spill]] }
  0x19   : > { %s178_s29 = sshll.u32 %s3549_s2, 4  ;;  %s3011_s11 = smov 16   ;;  %s179_s29 = int_to_ptr.hbm [resolvable:$true] %s178_s29 }
  0x1a   : > { %2675 = dma.hbm_to_vmem [thread:$0]  (!%p2673_p10), %s179_s29, 768, %s181_s6, [#allocation7], %s3010_s10, %s3010_s10, %s3011_s11  }
  0x1b   : > { %s3012_s12 = smov [#allocation9]   ;;  %s33_s14 = sadd.s32 1, %s2999_s20 }
  0x1c   : > { %s194_s13 = sshll.u32 %s3012_s12, 4  ;;  %s36_s24 = sadd.s32 1, %s3003_s21  ;;  %s195_s13 = int_to_ptr.vmem [resolvable:$true] %s194_s13 }
  0x1d   : > { %p34_p11 = scmp.ge.s32.totalorder %s33_s14, 4  ;;  %s45_s27 = sadd.s32 1, %s2987_s17 }
  0x1e   : > { %s192_s9 = sshll.u32 %s3551_s3, 4  ;;  %p52_p12 = scmp.ne.s32.totalorder %s2987_s17, %s2983_s16  ;;  %s193_s9 = int_to_ptr.hbm [resolvable:$true] %s192_s9 }
  0x1f   : > { %2678 = dma.hbm_to_vmem [thread:$0]  (!%p2673_p10), %s193_s9, 768, %s195_s13, [#allocation10], %s3010_s10, %s3010_s10, %s3011_s11  }
  0x20   : > { %p53_p13 = scmp.eq.s32.totalorder %s3007_s22, 0  ;;  %s3576_s14 = smov (%p34_p11, %s33_s14), 0 }
  0x21   : > { %3552 = sst [smem:[#allocation19_spill]] %s3576_s14  ;;  %s3578_s24 = smov (!%p34_p11, %s36_s24), %s3003_s21 }
  0x22   : > { %s41_s28 = ssub.s32 %s2999_s20, %s3576_s14  ;;  %p3135_p0 = por %p53_p13, %p52_p12 }
  0x23   : > { %p38_p3 = scmp.ge.s32.totalorder %s3578_s24, 2  ;;  %p3141_p5 = por %p154_p2, %p52_p12 }
  0x24   : > { %p2692_p7 = scmp.lt.s32.totalorder %s3007_s22, 8  ;;  %s208_s6 = sand.u32 1, %s2987_s17  }
  0x25   : > { %s3554_s5 = scalar_select %p3141_p5, 1, 0 }
  0x26   : > { %s3580_s24 = smov (%p38_p3, %s3578_s24), 0  ;;  %s2653_s7 = smul.u32 24, %s208_s6 }
  0x27   : > { %3555 = sst [smem:[#allocation20_spill]] %s3554_s5  ;;  %s40_s8 = ssub.s32 %s3003_s21, %s3580_s24 }
  0x28   : > { %3556 = sst [smem:[#allocation21_spill]] %s3580_s24  ;;  %s2654_s9 = smul.u32 12, %s3003_s21 }
  0x29   : > { %s42_s10 = sor.u32 %s41_s28, %s40_s8  ;;  %s212_s13 = scalar_lea.vmem [#allocation3], %s2653_s7 }
  0x2a   : > { %p43_p9 = scmp.eq.s32.totalorder %s42_s10, 0  ;;  %s216_s11 = sadd.s32 %s2999_s20, %s2654_s9 }
  0x2b   : > { %s2631_s12 = sshll.u32 %s216_s11, 3  ;;  %s221_s2 = sshll.u32 %s212_s13, 4  ;;  %s222_s2 = int_to_ptr.vmem [resolvable:$true] %s221_s2 }
  0x2c   : > { %s3154_s3 = scalar_select %p43_p9, %s2987_s17, %s45_s27  }
  0x2d   : > { %s3557_s0 = sld [smem:[#allocation22_spill]]  ;;  %p3163_p2 = pnand %p2692_p7, %p3135_p0 }
  0x2e   : > { %s209_s28 = scalar_lea.sflag [#allocation4], %s208_s6  ;;  %s3013_s8 = smov 512  }
  0x2f   : > { %s3014_s9 = smov 128   ;;  %s3015_s27 = smov 8  }
  0x30   : > { %s241_s14 = scalar_lea.hbm %s3532_s1, %s2631_s12  ;;  %s235_s11 = scalar_lea.vmem [#allocation6], %s2653_s7 }
  0x31   : > { %s242_s29 = sshll.u32 %s241_s14, 4  ;;  %s244_s13 = sshll.u32 %s235_s11, 4  ;;  %s243_s29 = int_to_ptr.hbm [resolvable:$true] %s242_s29  ;;  %s245_s13 = int_to_ptr.vmem [resolvable:$true] %s244_s13 }
  0x32   : > { %s3178_s6 = sand.u32 (!%p3113_p8), 1, %s2983_s16  }
  0x33   : > { %s218_s15 = scalar_lea.hbm %s3557_s0, %s2631_s12  ;;  %256 = sbr.rel (%p3113_p8) target bundleno = 423 (0x1a7), region = 36 }
  0x34   : > { %s219_s5 = sshll.u32 %s218_s15, 4  ;;  %s231_s15 = sand.u32 1, %s3007_s22   ;;  %s220_s5 = int_to_ptr.hbm [resolvable:$true] %s219_s5 }
  0x35   : > { %2682 = dma.hbm_to_vmem [thread:$0]  (!%p3163_p2), %s220_s5, 384, %s222_s2, %s209_s28, %s3013_s8, %s3014_s9, %s3015_s27  }
  0x36   : > { %s232_s0 = scalar_lea.sflag [#allocation7], %s231_s15  ;;  %s2657_s2 = smul.u32 (!%p3113_p8), 24, %s3178_s6 }
  0x37   : > { %2685 = dma.hbm_to_vmem [thread:$0]  (!%p3163_p2), %s243_s29, 384, %s245_s13, %s232_s0, %s3013_s8, %s3014_s9, %s3015_s27  }
  0x38   : > { %s259_s5 = scalar_lea.sflag [#allocation4], %s3178_s6  ;;  %s3182_s12 = scalar_lea.vmem [#allocation3], %s2657_s2 }
  0x39   : > { %2958 = dma.done.wait (%p3100_p4), %s259_s5, 384  }
  0x3a   : > { %2960 = vsyncadd (%p3100_p4), %s259_s5, 4294966912  ;;  %s268_s0 = sand.u32 1, %s3091_s23   ;;  %s3189_s24 = scalar_lea.vmem [#allocation6], %s2657_s2 }
  0x3b   : > { %s269_s30 = scalar_lea.sflag [#allocation7], %s268_s0 }
  0x3c   : > { %2962 = dma.done.wait (%p3100_p4), %s269_s30, 384  }
  0x3d   : > { %2964 = vsyncadd (%p3100_p4), %s269_s30, 4294966912 }
  0x3e   : > { %2966 = dma.done.wait (%p59_p1), [#allocation7], 768  }
  0x3f   : > { %2968 = vsyncadd (%p59_p1), [#allocation7], 4294966528 }
  0x40   : > { %2970 = dma.done.wait (%p59_p1), [#allocation10], 768  }
  0x41   : > { %2972 = vsyncadd (%p59_p1), [#allocation10], 4294966528  ;;  %s2636_s7 = sshll.u32 %s3178_s6, 1  ;;  %p2637_p8 = scmp.ne.s32.totalorder %s2991_s18, 0 }
  0x42   : > { %s3204_s28 = scalar_lea.vmem [#allocation11], %s2636_s7 }
  0x43   : > { %317 = sbr.rel (%p2637_p8) target bundleno = 74 (0x4a), region = 56 }
  0x48   : > { %vm318_vm0 = vcmask 7168   ;;  %v3016_v0 = vmov 0.0  }
  0x49   : > { %319 = vst.msk [vmem:[#allocation2] sm:$0xff] %vm318_vm0, %v3016_v0 }
  0x4a PF: > { %v327_v1 = vld [vmem:[#allocation8 + $0x10] sm:$0xff]  ;;  %v2638_v2 = vld [vmem:[%s3182_s12 + $0x8] sm:$0xff]  ;;  %vm329_vm1 = vcmask 64512   ;;  %v328_v3 = vld [vmem:[#allocation8 + $0x18] sm:$0xff]  ;;  %v3017_v56 = vmov 0   ;;  %s3018_s23 = smov 1  }
  0x4b   : > { %v348_v4 = vand.u32 4294901760, %v327_v1  ;;  %v331_v5 = vsel %vm329_vm1, %v2638_v2, 0  ;;  %v494_v6 = vand.u32 4294901760, %v328_v3  ;;  %v322_v7 = vld [vmem:[#allocation8] sm:$0xff]  ;;  %v323_v10 = vld [vmem:[#allocation8 + $0x8] sm:$0xff]  ;;  %2776 = vset.pattern.permute.xlu0 %v3017_v56  ;;  %s2649_s25 = sshll.u32 %s2991_s18, 1 }
  0x4c   : > { %v350_v8 = vand.u32 4294901760, %v331_v5  ;;  %v643_v9 = vand.u32 4294901760, %v322_v7  ;;  %v3209_v17 = vand.u32 4294901760, %v323_v10  ;;  %v321_v27 = vld [vmem:[%s3182_s12] sm:$0xff]  ;;  %v924_v39 = vld [vmem:[#allocation8 + $0x28] sm:$0xff]  ;;  %s2650_s8 = sshll.u32 %s2995_s19, 3 }
  0x4d   : > { %v375_v11 = vsub.f32 %v327_v1, %v348_v4  ;;  %425 = vmatpush.msra.mxu3 %v348_v4  ;;  %349 = vmatpush.msra.mxu0 %v348_v4  ;;  %v521_v12 = vsub.f32 %v328_v3, %v494_v6  ;;  %v626_v29 = vsel %vm329_vm1, %v321_v27, 0  ;;  %v923_v36 = vld [vmem:[#allocation8 + $0x20] sm:$0xff]  ;;  %v1089_v42 = vand.u32 4294901760, %v924_v39  ;;  %v2639_v46 = vld [vmem:[%s3182_s12 + $0x10] sm:$0xff]  ;;  %v2640_v3 = vld [vmem:[%s3189_s24 + $0x8] sm:$0xff]  ;;  %s2490_s9 = sadd.s32 %s2650_s8, %s2649_s25  ;;  %s2493_s15 = sshll.u32 %s3204_s28, 4  ;;  %s2494_s15 = int_to_ptr.vmem [resolvable:$true] %s2493_s15 }
  0x4e   : > { %v351_v13 = vsub.f32 %v331_v5, %v350_v8  ;;  %v670_v16 = vsub.f32 %v322_v7, %v643_v9  ;;  %v816_v25 = vsub.f32 %v323_v10, %v3209_v17  ;;  %v645_v31 = vand.u32 4294901760, %v626_v29  ;;  %v1235_v55 = vld [vmem:[#allocation9 + $0x10] sm:$0xff]  ;;  %v1236_v59 = vld [vmem:[#allocation9 + $0x18] sm:$0xff]  ;;  %s2491_s26 = scalar_lea.hbm %s3535_s4, %s2490_s9  ;;  %s2479_s18 = scalar_lea.sflag [#allocation5], %s3178_s6 }
  0x4f   : > { %402 = vmatpush.msra.mxu2 %v375_v11  ;;  %v376_v14 = vand.u32 4294901760, %v375_v11  ;;  %v522_v15 = vand.u32 4294901760, %v521_v12  ;;  %v943_v38 = vand.u32 4294901760, %v923_v36  ;;  %v1116_v45 = vsub.f32 %v924_v39, %v1089_v42  ;;  %s2495_s29 = sshll.u32 %s2491_s26, 4  ;;  %s2917_s5 = scalar_lea.hbm %s3535_s4, 16  ;;  %s2496_s29 = int_to_ptr.hbm [resolvable:$true] %s2495_s29 }
  0x50   : > { %405 = vmatmul.f32.vlgmr.msra.gmra.mxu2 %v351_v13  ;;  %v352_v18 = vand.u32 4294901760, %v351_v13  ;;  %v671_v24 = vand.u32 4294901760, %v670_v16  ;;  %v817_v30 = vand.u32 4294901760, %v816_v25  ;;  %v646_v34 = vsub.f32 %v626_v29, %v645_v31  ;;  %v320_v61 = vld [vmem:[#allocation2] sm:$0xff]  ;;  %s2911_s19 = sshra.s32 %s2496_s29, 4  ;;  %s2912_s19 = int_to_ptr.hbm [resolvable:$true] %s2911_s19 }
  0x51   : > { %495 = vmatpush.msrb.mxu2 %v494_v6  ;;  %v377_v19 = vsub.f32 %v375_v11, %v376_v14  ;;  %451 = vmatpush.msrb.mxu0 %v376_v14  ;;  %v523_v20 = vsub.f32 %v521_v12, %v522_v15  ;;  %v970_v41 = vsub.f32 %v923_v36, %v943_v38  ;;  %v926_v48 = vsel %vm329_vm1, %v2639_v46, 0  ;;  %s2913_s11 = scalar_lea.hbm %s2912_s19, 2  ;;  %p2918_p11 = scmp.lt.s32.totalorder %s2912_s19, %s3535_s4 }
  0x52   : > { %429 = vmatmul.f32.vlgmr.msra.gmra.mxu3 %v352_v18  ;;  %v353_v21 = vsub.f32 %v351_v13, %v352_v18  ;;  %v672_v28 = vsub.f32 %v670_v16, %v671_v24  ;;  %v818_v33 = vsub.f32 %v816_v25, %v817_v30  ;;  %v647_v37 = vand.u32 4294901760, %v646_v34  ;;  %1224 = vperm.xlu0 %2776, %v320_v61   ;;  %p2914_p1 = scmp.ne.s32.totalorder %s2912_s19, %s2913_s11  ;;  %p2919_p12 = scmp.lt.s32.totalorder %s2917_s5, %s2913_s11 }
  0x53   : > { %597 = vmatpush.msra.mxu2 %v522_v15  ;;  %v378_v22 = vand.u32 4294901760, %v377_v19  ;;  %v524_v23 = vand.u32 4294901760, %v523_v20  ;;  %v971_v44 = vand.u32 4294901760, %v970_v41  ;;  %v1117_v49 = vand.u32 4294901760, %v1116_v45  ;;  %v1231_v15 = vld [vmem:[#allocation9 + $0x8] sm:$0xff] }
  0x54   : > { %v354_v26 = vand.u32 4294901760, %v353_v21  ;;  %v673_v32 = vand.u32 4294901760, %v672_v28  ;;  %v819_v35 = vand.u32 4294901760, %v818_v33  ;;  %v648_v40 = vsub.f32 %v646_v34, %v647_v37  ;;  %p2915_p4 = pnand %p2914_p1, %p3141_p5  ;;  %p2920_p13 = por %p2919_p12, %p2918_p11 }
  0x55   : > { %379 = vmatpush.msra.mxu1 %v378_v22  ;;  %525 = vmatpush.msrb.mxu3 %v524_v23  ;;  %v972_v47 = vsub.f32 %v970_v41, %v971_v44  ;;  %v945_v50 = vand.u32 4294901760, %v926_v48  ;;  %v1118_v52 = vsub.f32 %v1116_v45, %v1117_v49  ;;  %v1255_v58 = vand.u32 4294901760, %v1235_v55  ;;  %v1229_v22 = vld [vmem:[%s3189_s24] sm:$0xff] }
  0x56   : > { %355 = vmatmul.f32.vlgmr.msra.gmra.mxu0 %v354_v26  ;;  %381 = vmatmul.f32.vlgmr.msra.gmra.mxu1 %v350_v8  ;;  %v649_v43 = vand.u32 4294901760, %v648_v40  ;;  %v1401_v63 = vand.u32 4294901760, %v1236_v59  ;;  %v1533_v23 = vsel %vm329_vm1, %v1229_v22, 0  ;;  %p2916_p10 = pneg %p2915_p4 }
  0x57   : > { %473 = vmatpush.msrb.mxu1 %v348_v4  ;;  %548 = vmatpush.msra.mxu0 %v521_v12  ;;  %v973_v51 = vand.u32 4294901760, %v972_v47  ;;  %v946_v53 = vsub.f32 %v926_v48, %v945_v50  ;;  %v1119_v54 = vand.u32 4294901760, %v1118_v52  ;;  %v1282_v62 = vsub.f32 %v1235_v55, %v1255_v58  ;;  %v1230_v12 = vld [vmem:[#allocation9] sm:$0xff] }
  0x58   : > { %501 = vmatmul.f32.vlgmr.msrb.gmra.mxu2 %v354_v26  ;;  %619 = vmatpush.msra.mxu3 %v494_v6  ;;  %v1428_v2 = vsub.f32 %v1236_v59, %v1401_v63  ;;  %v1238_v4 = vsel %vm329_vm1, %v2640_v3, 0  ;;  %v1550_v14 = vand.u32 4294901760, %v1230_v12  ;;  %v1552_v26 = vand.u32 4294901760, %v1533_v23  ;;  %p2921_p0 = pnand %p2920_p13, %p2916_p10 }
  0x59   : > { %571 = vmatpush.msra.mxu1 %v494_v6  ;;  %697 = vmatpush.msrb.mxu2 %v670_v16  ;;  %v947_v57 = vand.u32 4294901760, %v946_v53  ;;  %v1283_v1 = vand.u32 4294901760, %v1282_v62  ;;  %v1257_v7 = vand.u32 4294901760, %v1238_v4 }
  0x5a   : > { %527 = vmatmul.f32.vlgmr.msrb.gmra.mxu3 %v350_v8  ;;  %v1429_v6 = vand.u32 4294901760, %v1428_v2  ;;  %v1553_v29 = vsub.f32 %v1533_v23, %v1552_v26 }
  0x5b   : > { %720 = vmatpush.msrb.mxu3 %v643_v9  ;;  %v948_v60 = vsub.f32 %v946_v53, %v947_v57  ;;  %v1284_v5 = vsub.f32 %v1282_v62, %v1283_v1  ;;  %v1258_v10 = vsub.f32 %v1238_v4, %v1257_v7 }
  0x5d   : > { %v949_v0 = vand.u32 4294901760, %v948_v60 }
  0x5e   : > { %453 = vmatmul.f32.vlgmr.msrb.gmra.mxu0 %v350_v8  ;;  %475 = vmatmul.f32.vlgmr.msrb.gmra.mxu1 %v350_v8 }
  0x5f   : > { %644 = vmatpush.msrb.mxu0 %v643_v9  ;;  %674 = vmatpush.msrb.mxu1 %v673_v32  ;;  %v1554_v32 = vand.u32 4294901760, %v1553_v29 }
  0x60   : > { %599 = vmatmul.f32.vlgmr.msra.gmra.mxu2 %v350_v8 }
  0x61   : > { %790 = vmatpush.msra.mxu2 %v3209_v17 }
  0x62   : > { %621 = vmatmul.f32.vlgmr.msra.gmra.mxu3 %v350_v8  ;;  %v1285_v8 = vand.u32 4294901760, %v1284_v5 }
  0x63   : > { %820 = vmatpush.msra.mxu3 %v819_v35  ;;  %v1555_v35 = vsub.f32 %v1553_v29, %v1554_v32 }
  0x66   : > { %551 = vmatmul.f32.vlgmr.msra.gmra.mxu0 %v351_v13  ;;  %575 = vmatmul.f32.vlgmr.msra.gmra.mxu1 %v352_v18  ;;  %v1259_v13 = vand.u32 4294901760, %v1258_v10  ;;  %v1696_v18 = vand.u32 4294901760, %v1231_v15 }
  0x67   : > { %746 = vmatpush.msra.mxu0 %v671_v24  ;;  %768 = vmatpush.msra.mxu1 %v643_v9  ;;  %v1430_v9 = vsub.f32 %v1428_v2, %v1429_v6 }
  0x68   : > { %700 = vmatmul.f32.vlgmr.msrb.gmra.mxu2 %v646_v34  ;;  %v1260_v16 = vsub.f32 %v1258_v10, %v1259_v13  ;;  %v1723_v21 = vsub.f32 %v1231_v15, %v1696_v18 }
  0x69   : > { %892 = vmatpush.msrb.mxu2 %v817_v30  ;;  %v1431_v11 = vand.u32 4294901760, %v1430_v9 }
  0x6a   : > { %724 = vmatmul.f32.vlgmr.msrb.gmra.mxu3 %v647_v37  ;;  %v1261_v19 = vand.u32 4294901760, %v1260_v16 }
  0x6b   : > { %914 = vmatpush.msrb.mxu3 %v3209_v17 }
  0x6e   : > { %650 = vmatmul.f32.vlgmr.msrb.gmra.mxu0 %v649_v43  ;;  %676 = vmatmul.f32.vlgmr.msrb.gmra.mxu1 %v645_v31 }
  0x6f   : > { %843 = vmatpush.msrb.mxu0 %v816_v25  ;;  %866 = vmatpush.msrb.mxu1 %v3209_v17  ;;  %v1577_v17 = vsub.f32 %v1230_v12, %v1550_v14  ;;  %v1724_v25 = vand.u32 4294901760, %v1723_v21 }
  0x70   : > { %796 = vmatmul.f32.vlgmr.msra.gmra.mxu2 %v649_v43 }
  0x71   : > { %997 = vmatpush.msra.mxu2 %v970_v41  ;;  %v1578_v20 = vand.u32 4294901760, %v1577_v17  ;;  %v1725_v28 = vsub.f32 %v1723_v21, %v1724_v25  ;;  %v2641_v41 = vld [vmem:[%s3189_s24 + $0x10] sm:$0xff] }
  0x72   : > { %822 = vmatmul.f32.vlgmr.msra.gmra.mxu3 %v645_v31 }
  0x73   : > { %1020 = vmatpush.msra.mxu3 %v943_v38  ;;  %v1579_v24 = vsub.f32 %v1577_v17, %v1578_v20  ;;  %v1726_v30 = vand.u32 4294901760, %v1725_v28 }
  0x75   : > { %v1580_v27 = vand.u32 4294901760, %v1579_v24 }
  0x76   : > { %748 = vmatmul.f32.vlgmr.msra.gmra.mxu0 %v645_v31  ;;  %770 = vmatmul.f32.vlgmr.msra.gmra.mxu1 %v645_v31 }
  0x77   : > { %944 = vmatpush.msra.mxu0 %v943_v38  ;;  %974 = vmatpush.msra.mxu1 %v973_v51 }
  0x78   : > { %894 = vmatmul.f32.vlgmr.msrb.gmra.mxu2 %v645_v31 }
  0x79   : > { %1090 = vmatpush.msrb.mxu2 %v1089_v42 }
  0x7a   : > { %916 = vmatmul.f32.vlgmr.msrb.gmra.mxu3 %v645_v31  ;;  %v1830_v31 = vld [vmem:[#allocation9 + $0x20] sm:$0xff] }
  0x7b   : > { %1120 = vmatpush.msrb.mxu3 %v1119_v54  ;;  %v1850_v33 = vand.u32 4294901760, %v1830_v31 }
  0x7d   : > { %v1877_v36 = vsub.f32 %v1830_v31, %v1850_v33 }
  0x7e   : > { %846 = vmatmul.f32.vlgmr.msrb.gmra.mxu0 %v646_v34  ;;  %870 = vmatmul.f32.vlgmr.msrb.gmra.mxu1 %v647_v37  ;;  %v1831_v34 = vld [vmem:[#allocation9 + $0x28] sm:$0xff] }
  0x7f   : > { %1046 = vmatpush.msrb.mxu0 %v971_v44  ;;  %1068 = vmatpush.msrb.mxu1 %v943_v38  ;;  %v1996_v37 = vand.u32 4294901760, %v1831_v34  ;;  %v1556_v38 = vand.u32 4294901760, %v1555_v35  ;;  %v1878_v39 = vand.u32 4294901760, %v1877_v36 }
  0x80   : > { %1000 = vmatmul.f32.vlgmr.msra.gmra.mxu2 %v946_v53 }
  0x81   : > { %1192 = vmatpush.msra.mxu2 %v1117_v49  ;;  %v2023_v40 = vsub.f32 %v1831_v34, %v1996_v37  ;;  %v1879_v43 = vsub.f32 %v1877_v36, %v1878_v39 }
  0x82   : > { %1024 = vmatmul.f32.vlgmr.msra.gmra.mxu3 %v947_v57 }
  0x83   : > { %1214 = vmatpush.msra.mxu3 %v1089_v42  ;;  %v2024_v44 = vand.u32 4294901760, %v2023_v40  ;;  %v1880_v46 = vand.u32 4294901760, %v1879_v43 }
  0x85   : > { %v2025_v47 = vsub.f32 %v2023_v40, %v2024_v44 }
  0x86   : > { %950 = vmatmul.f32.vlgmr.msra.gmra.mxu0 %v949_v0  ;;  %976 = vmatmul.f32.vlgmr.msra.gmra.mxu1 %v945_v50 }
  0x87   : > { %1143 = vmatpush.msra.mxu0 %v1116_v45  ;;  %1166 = vmatpush.msra.mxu1 %v1089_v42  ;;  %v1833_v42 = vsel %vm329_vm1, %v2641_v41, 0  ;;  %v2026_v49 = vand.u32 4294901760, %v2025_v47 }
  0x88   : > { %1096 = vmatmul.f32.vlgmr.msrb.gmra.mxu2 %v949_v0  ;;  %v1852_v45 = vand.u32 4294901760, %v1833_v42 }
  0x89   : > { %1309 = vmatpush.msrb.mxu2 %v1282_v62 }
  0x8a   : > { %1122 = vmatmul.f32.vlgmr.msrb.gmra.mxu3 %v945_v50  ;;  %v1853_v48 = vsub.f32 %v1833_v42, %v1852_v45 }
  0x8b   : > { %1332 = vmatpush.msrb.mxu3 %v1255_v58 }
  0x8e   : > { %1048 = vmatmul.f32.vlgmr.msrb.gmra.mxu0 %v945_v50  ;;  %1070 = vmatmul.f32.vlgmr.msrb.gmra.mxu1 %v945_v50 }
  0x8f   : > { %1256 = vmatpush.msrb.mxu0 %v1255_v58  ;;  %1286 = vmatpush.msrb.mxu1 %v1285_v8 }
  0x90   : > { %1194 = vmatmul.f32.vlgmr.msra.gmra.mxu2 %v945_v50 }
  0x91   : > { %1402 = vmatpush.msra.mxu2 %v1401_v63 }
  0x92   : > { %1216 = vmatmul.f32.vlgmr.msra.gmra.mxu3 %v945_v50  ;;  %v1854_v50 = vand.u32 4294901760, %v1853_v48 }
  0x93   : > { %1432 = vmatpush.msra.mxu3 %v1431_v11 }
  0x94   : > { %v1855_v51 = vsub.f32 %v1853_v48, %v1854_v50 }
  0x96   : > { %1146 = vmatmul.f32.vlgmr.msra.gmra.mxu0 %v946_v53  ;;  %1170 = vmatmul.f32.vlgmr.msra.gmra.mxu1 %v947_v57  ;;  %v1856_v52 = vand.u32 4294901760, %v1855_v51 }
  0x97   : > { %1358 = vmatpush.msra.mxu0 %v1283_v1  ;;  %1380 = vmatpush.msra.mxu1 %v1255_v58 }
  0x98   : > { %1312 = vmatmul.f32.vlgmr.msrb.gmra.mxu2 %v1258_v10 }
  0x99   : > { %1504 = vmatpush.msrb.mxu2 %v1429_v6 }
  0x9a   : > { %1336 = vmatmul.f32.vlgmr.msrb.gmra.mxu3 %v1259_v13 }
  0x9b   : > { %1526 = vmatpush.msrb.mxu3 %v1401_v63 }
  0x9e   : > { %1262 = vmatmul.f32.vlgmr.msrb.gmra.mxu0 %v1261_v19  ;;  %1288 = vmatmul.f32.vlgmr.msrb.gmra.mxu1 %v1257_v7 }
  0x9f   : > { %1455 = vmatpush.msrb.mxu0 %v1428_v2  ;;  %1478 = vmatpush.msrb.mxu1 %v1401_v63 }
  0xa0   : > { %1408 = vmatmul.f32.vlgmr.msra.gmra.mxu2 %v1261_v19 }
  0xa1   : > { %1604 = vmatpush.msra.mxu2 %v1577_v17 }
  0xa2   : > { %1434 = vmatmul.f32.vlgmr.msra.gmra.mxu3 %v1257_v7 }
  0xa3   : > { %1627 = vmatpush.msra.mxu3 %v1550_v14 }
  0xa6   : > { %1360 = vmatmul.f32.vlgmr.msra.gmra.mxu0 %v1257_v7  ;;  %1382 = vmatmul.f32.vlgmr.msra.gmra.mxu1 %v1257_v7 }
  0xa7   : > { %1551 = vmatpush.msra.mxu0 %v1550_v14  ;;  %1581 = vmatpush.msra.mxu1 %v1580_v27 }
  0xa8   : > { %1506 = vmatmul.f32.vlgmr.msrb.gmra.mxu2 %v1257_v7 }
  0xa9   : > { %1697 = vmatpush.msrb.mxu2 %v1696_v18 }
  0xaa   : > { %1528 = vmatmul.f32.vlgmr.msrb.gmra.mxu3 %v1257_v7 }
  0xab   : > { %1727 = vmatpush.msrb.mxu3 %v1726_v30 }
  0xae   : > { %1458 = vmatmul.f32.vlgmr.msrb.gmra.mxu0 %v1258_v10  ;;  %1482 = vmatmul.f32.vlgmr.msrb.gmra.mxu1 %v1259_v13 }
  0xaf   : > { %1653 = vmatpush.msrb.mxu0 %v1578_v20  ;;  %1675 = vmatpush.msrb.mxu1 %v1550_v14 }
  0xb0   : > { %1607 = vmatmul.f32.vlgmr.msra.gmra.mxu2 %v1553_v29 }
  0xb1   : > { %1799 = vmatpush.msra.mxu2 %v1724_v25 }
  0xb2   : > { %1631 = vmatmul.f32.vlgmr.msra.gmra.mxu3 %v1554_v32 }
  0xb3   : > { %1821 = vmatpush.msra.mxu3 %v1696_v18 }
  0xb6   : > { %1557 = vmatmul.f32.vlgmr.msra.gmra.mxu0 %v1556_v38  ;;  %1583 = vmatmul.f32.vlgmr.msra.gmra.mxu1 %v1552_v26 }
  0xb7   : > { %1750 = vmatpush.msra.mxu0 %v1723_v21  ;;  %1773 = vmatpush.msra.mxu1 %v1696_v18 }
  0xb8   : > { %1703 = vmatmul.f32.vlgmr.msrb.gmra.mxu2 %v1556_v38 }
  0xb9   : > { %1904 = vmatpush.msrb.mxu2 %v1877_v36 }
  0xba   : > { %1729 = vmatmul.f32.vlgmr.msrb.gmra.mxu3 %v1552_v26 }
  0xbb   : > { %1927 = vmatpush.msrb.mxu3 %v1850_v33 }
  0xbe   : > { %1655 = vmatmul.f32.vlgmr.msrb.gmra.mxu0 %v1552_v26  ;;  %1677 = vmatmul.f32.vlgmr.msrb.gmra.mxu1 %v1552_v26 }
  0xbf   : > { %1851 = vmatpush.msrb.mxu0 %v1850_v33  ;;  %1881 = vmatpush.msrb.mxu1 %v1880_v46 }
  0xc0   : > { %1801 = vmatmul.f32.vlgmr.msra.gmra.mxu2 %v1552_v26 }
  0xc1   : > { %1997 = vmatpush.msra.mxu2 %v1996_v37 }
  0xc2   : > { %1823 = vmatmul.f32.vlgmr.msra.gmra.mxu3 %v1552_v26 }
  0xc3   : > { %2027 = vmatpush.msra.mxu3 %v2026_v49 }
  0xc4   : > { %v1225_v46 = vpop.permute.xlu0 %1224 }
  0xc6   : > { %1753 = vmatmul.f32.vlgmr.msra.gmra.mxu0 %v1553_v29  ;;  %1777 = vmatmul.f32.vlgmr.msra.gmra.mxu1 %v1554_v32 }
  0xc7   : > { %1953 = vmatpush.msra.mxu0 %v1878_v39  ;;  %1975 = vmatpush.msra.mxu1 %v1850_v33 }
  0xc8   : > { %1907 = vmatmul.f32.vlgmr.msrb.gmra.mxu2 %v1853_v48 }
  0xc9   : > { %2099 = vmatpush.msrb.mxu2 %v2024_v44 }
  0xca   : > { %1931 = vmatmul.f32.vlgmr.msrb.gmra.mxu3 %v1854_v50 }
  0xcb   : > { %2121 = vmatpush.msrb.mxu3 %v1996_v37 }
  0xce   : > { %1857 = vmatmul.f32.vlgmr.msrb.gmra.mxu0 %v1856_v52  ;;  %1883 = vmatmul.f32.vlgmr.msrb.gmra.mxu1 %v1852_v45 }
  0xcf   : > { %2050 = vmatpush.msrb.mxu0 %v2023_v40  ;;  %2073 = vmatpush.msrb.mxu1 %v1996_v37 }
  0xd0   : > { %2003 = vmatmul.f32.vlgmr.msra.gmra.mxu2 %v1856_v52 }
  0xd2   : > { %2029 = vmatmul.f32.vlgmr.msra.gmra.mxu3 %v1852_v45 }
  0xd3   : > { %v356_v53 = vpop.f32.mrf.mxu0  ;;  %v382_v54 = vpop.f32.mrf.mxu1 }
  0xd4   : > { %v383_v55 = vadd.f32 %v382_v54, %v356_v53  ;;  %v406_v57 = vpop.f32.mrf.mxu2 }
  0xd5   : > { %v430_v58 = vpop.f32.mrf.mxu3 }
  0xd6   : > { %v407_v59 = vadd.f32 %v406_v57, %v383_v55  ;;  %1955 = vmatmul.f32.vlgmr.msra.gmra.mxu0 %v1852_v45  ;;  %1977 = vmatmul.f32.vlgmr.msra.gmra.mxu1 %v1852_v45 }
  0xd8   : > { %v431_v60 = vadd.f32 %v430_v58, %v407_v59  ;;  %2101 = vmatmul.f32.vlgmr.msrb.gmra.mxu2 %v1852_v45 }
  0xda   : > { %2123 = vmatmul.f32.vlgmr.msrb.gmra.mxu3 %v1852_v45 }
  0xdb   : > { %v454_v61 = vpop.f32.mrf.mxu0  ;;  %v476_v62 = vpop.f32.mrf.mxu1 }
  0xdc   : > { %v455_v63 = vadd.f32 %v454_v61, %v431_v60  ;;  %v502_v0 = vpop.f32.mrf.mxu2 }
  0xdd   : > { %v528_v1 = vpop.f32.mrf.mxu3 }
  0xde   : > { %v477_v2 = vadd.f32 %v476_v62, %v455_v63  ;;  %2053 = vmatmul.f32.vlgmr.msrb.gmra.mxu0 %v1853_v48  ;;  %2077 = vmatmul.f32.vlgmr.msrb.gmra.mxu1 %v1854_v50  ;;  %v529_v15 = vadd.f32 %v528_v1, %v502_v0 }
  0xe3   : > { %v552_v3 = vpop.f32.mrf.mxu0  ;;  %v576_v4 = vpop.f32.mrf.mxu1 }
  0xe4   : > { %v600_v5 = vpop.f32.mrf.mxu2  ;;  %v553_v16 = vadd.f32 %v552_v3, %v529_v15 }
  0xe5   : > { %v622_v6 = vpop.f32.mrf.mxu3 }
  0xe6   : > { %v577_v22 = vadd.f32 %v576_v4, %v553_v16 }
  0xe8   : > { %v601_v24 = vadd.f32 %v600_v5, %v577_v22 }
  0xea   : > { %v623_v31 = vadd.f32 %v622_v6, %v601_v24  ;;  %v3021_v24 = vmov 2131351028  }
  0xeb   : > { %v651_v7 = vpop.f32.mrf.mxu0  ;;  %v677_v8 = vpop.f32.mrf.mxu1 }
  0xec   : > { %v701_v9 = vpop.f32.mrf.mxu2  ;;  %v652_v17 = vadd.f32 %v651_v7, %v477_v2 }
  0xed   : > { %v725_v10 = vpop.f32.mrf.mxu3 }
  0xee   : > { %v678_v23 = vadd.f32 %v677_v8, %v652_v17 }
  0xf0   : > { %v702_v25 = vadd.f32 %v701_v9, %v678_v23 }
  0xf2   : > { %v726_v32 = vadd.f32 %v725_v10, %v702_v25 }
  0xf3   : > { %v749_v11 = vpop.f32.mrf.mxu0  ;;  %v771_v12 = vpop.f32.mrf.mxu1 }
  0xf4   : > { %v797_v13 = vpop.f32.mrf.mxu2  ;;  %v750_v35 = vadd.f32 %v749_v11, %v726_v32 }
  0xf5   : > { %v823_v14 = vpop.f32.mrf.mxu3  ;;  %v798_v34 = vadd.f32 %v797_v13, %v623_v31 }
  0xf6   : > { %v772_v42 = vadd.f32 %v771_v12, %v750_v35 }
  0xf7   : > { %v824_v39 = vadd.f32 %v823_v14, %v798_v34 }
  0xfb   : > { %v847_v18 = vpop.f32.mrf.mxu0  ;;  %v871_v19 = vpop.f32.mrf.mxu1 }
  0xfc   : > { %v895_v20 = vpop.f32.mrf.mxu2  ;;  %v848_v43 = vadd.f32 %v847_v18, %v824_v39 }
  0xfd   : > { %v917_v21 = vpop.f32.mrf.mxu3 }
  0xfe   : > { %v872_v48 = vadd.f32 %v871_v19, %v848_v43  ;;  %v3019_v19 = vmov 683565275  }
 0x100   : > { %v896_v57 = vadd.f32 %v895_v20, %v872_v48 }
 0x102   : > { %v918_v63 = vadd.f32 %v917_v21, %v896_v57  ;;  %v3020_v21 = vmov 2475754826  }
 0x103   : > { %v951_v26 = vpop.f32.mrf.mxu0  ;;  %v977_v27 = vpop.f32.mrf.mxu1 }
 0x104   : > { %v978_v28 = vadd.f32 %v977_v27, %v951_v26  ;;  %v1001_v29 = vpop.f32.mrf.mxu2  ;;  %v3022_v27 = vmov 2102212464  }
 0x105   : > { %v1025_v30 = vpop.f32.mrf.mxu3 }
 0x106   : > { %v1002_v33 = vadd.f32 %v1001_v29, %v978_v28 }
 0x108   : > { %v1026_v36 = vadd.f32 %v1025_v30, %v1002_v33  ;;  %v3023_v30 = vmov 920167782   ;;  %v3024_v33 = vmov 1326507024  }
 0x10b   : > { %v1049_v37 = vpop.f32.mrf.mxu0  ;;  %v1071_v38 = vpop.f32.mrf.mxu1 }
 0x10c   : > { %v1050_v40 = vadd.f32 %v1049_v37, %v1026_v36  ;;  %v1097_v41 = vpop.f32.mrf.mxu2 }
 0x10d   : > { %v1123_v45 = vpop.f32.mrf.mxu3 }
 0x10e   : > { %v1072_v44 = vadd.f32 %v1071_v38, %v1050_v40  ;;  %v1124_v49 = vadd.f32 %v1123_v45, %v1097_v41 }
 0x110   : > { %v1220_v47 = vadd.f32 %v1072_v44, %v772_v42 }
 0x112   : > { %v1227_v50 = vadd.f32 %v1225_v46, %v1220_v47 }
 0x113   : > { %v1147_v51 = vpop.f32.mrf.mxu0  ;;  %v1171_v52 = vpop.f32.mrf.mxu1 }
 0x114   : > { %v2129_v53 = vmul.f32 0.15915494, %v1227_v50  ;;  %v1148_v54 = vadd.f32 %v1147_v51, %v1124_v49  ;;  %v1195_v55 = vpop.f32.mrf.mxu2 }
 0x115   : > { %v1217_v60 = vpop.f32.mrf.mxu3 }
 0x116   : > { %v2131_v58 = vfloor.f32 %v2129_v53  ;;  %v1172_v59 = vadd.f32 %v1171_v52, %v1148_v54 }
 0x118   : > { %v2133_v61 = vmul.f32 6.2831855, %v2131_v58  ;;  %v1196_v62 = vadd.f32 %v1195_v55, %v1172_v59 }
 0x11a   : > { %v3226_v0 = vsub.f32 %v1227_v50, %v2133_v61  ;;  %v1218_v1 = vadd.f32 %v1217_v60, %v1196_v62 }
 0x11c   : > { %v2140_v2 = vand.u32 2139095040, %v3226_v0  ;;  %v1221_v3 = vadd.f32 %v1218_v1, %v918_v63  ;;  %v2137_v8 = vand.u32 2147483647, %v3226_v0 }
 0x11e   : > { %v2141_v4 = vshrl.u32 %v2140_v2, 23  ;;  %v1228_v5 = vadd.f32 %v1225_v46, %v1221_v3  ;;  %v2144_v12 = vand.u32 8388607, %v2137_v8 }
 0x120   : > { %v2642_v6 = vadd.s32 4294967169, %v2141_v4  ;;  %v2130_v7 = vmul.f32 0.15915494, %v1228_v5  ;;  %v2145_v17 = vor.u32 8388608, %v2144_v12 }
 0x122   : > { %v2147_v9 = vadd.s32 1, %v2642_v6  ;;  %v2132_v10 = vfloor.f32 %v2130_v7  ;;  %v3254_v43 = vshll.u32 %v2145_v17, 8 }
 0x124   : > { %vm2148_vm2 = vcmp.gt.s32.totalorder %v2147_v9, 0  ;;  %v2134_v11 = vmul.f32 6.2831855, %v2132_v10  ;;  %v2186_v52 = vand.u32 65535, %v3254_v43  ;;  %v2187_v58 = vshrl.u32 %v3254_v43, 16 }
 0x125   : > { %v2149_v13 = vsel %vm2148_vm2, %v2147_v9, 0 }
 0x126   : > { %v2151_v14 = vand.u32 31, %v2149_v13  ;;  %v3232_v15 = vsub.f32 %v1228_v5, %v2134_v11  ;;  %v3235_v18 = vshrl.u32 %v2149_v13, 5 }
 0x128   : > { %v2152_v16 = vsub.s32 32, %v2151_v14  ;;  %2473 = vrot.lane.b32.xlu0 %v3232_v15, %s3018_s23  ;;  %v2154_v20 = vshll.u32 %v3019_v19, %v2151_v14  ;;  %v2157_v22 = vshll.u32 %v3020_v21, %v2151_v14  ;;  %v2160_v26 = vshll.u32 %v3021_v24, %v2151_v14 }
 0x129   : > { %v2163_v29 = vshll.u32 %v3022_v27, %v2151_v14  ;;  %v2166_v32 = vshll.u32 %v3023_v30, %v2151_v14  ;;  %v2295_v38 = vand.u32 2139095040, %v3232_v15  ;;  %vm2169_vm3 = vcmp.lt.s32.totalorder %v3235_v18, 1 }
 0x12a   : > { %v2155_v23 = vshrl.u32 %v3020_v21, %v2152_v16  ;;  %v2158_v25 = vshrl.u32 %v3021_v24, %v2152_v16  ;;  %v2161_v28 = vshrl.u32 %v3022_v27, %v2152_v16  ;;  %v2164_v31 = vshrl.u32 %v3023_v30, %v2152_v16 }
 0x12b   : > { %v2167_v34 = vshrl.u32 %v3024_v33, %v2152_v16  ;;  %vm2172_vm4 = vcmp.lt.s32.totalorder %v3235_v18, 4  ;;  %vm2171_vm5 = vcmp.lt.s32.totalorder %v3235_v18, 3  ;;  %v2296_v46 = vshrl.u32 %v2295_v38, 23 }
 0x12c   : > { %v2156_v35 = vor.u32 %v2155_v23, %v2154_v20  ;;  %v2159_v36 = vor.u32 %v2158_v25, %v2157_v22  ;;  %v2162_v37 = vor.u32 %v2161_v28, %v2160_v26  ;;  %v2165_v39 = vor.u32 %v2164_v31, %v2163_v29  ;;  %v3283_v25 = vpop.f32.mrf.mxu0 }
 0x12d   : > { %v2168_v40 = vor.u32 %v2167_v34, %v2166_v32  ;;  %vm2170_vm6 = vcmp.lt.s32.totalorder %v3235_v18, 2  ;;  %v2645_v51 = vadd.s32 4294967169, %v2296_v46  ;;  %v2153_v4 = vshrl.u32 %v3019_v19, %v2152_v16 }
 0x12e   : > { %v2177_v41 = vsel %vm2169_vm3, %v2156_v35, %v2159_v36  ;;  %v2181_v42 = vsel %vm2169_vm3, %v2159_v36, %v2162_v37  ;;  %v2178_v44 = vsel %vm2172_vm4, %v2165_v39, 920167782  ;;  %v2174_v60 = vsel %vm2172_vm4, %v2162_v37, 2102212464 }
 0x12f   : > { %v2182_v45 = vsel %vm2172_vm4, %v2168_v40, 1326507024  ;;  %v2179_v47 = vsel %vm2171_vm5, %v2162_v37, %v2178_v44  ;;  %v2302_v57 = vadd.s32 1, %v2645_v51  ;;  %v2292_v6 = vand.u32 2147483647, %v3232_v15  ;;  %v3291_v40 = vpop.f32.mrf.mxu1 }
 0x130   : > { %v2183_v48 = vsel %vm2171_vm5, %v2165_v39, %v2182_v45  ;;  %v2180_v49 = vsel %vm2170_vm6, %v2177_v41, %v2179_v47  ;;  %v2173_v11 = vsel %vm2169_vm3, %v2153_v4, %v2156_v35  ;;  %v2175_v12 = vsel %vm2171_vm5, %v2159_v36, %v2174_v60 }
 0x131   : > { %v2184_v50 = vsel %vm2170_vm6, %v2181_v42, %v2183_v48  ;;  %v2211_v55 = vshrl.u32 %v2180_v49, 16  ;;  %v2210_v62 = vand.u32 65535, %v2180_v49  ;;  %vm2303_vm7 = vcmp.gt.s32.totalorder %v2302_v57, 0  ;;  %v3300_v48 = vpop.f32.mrf.mxu3 }
 0x132   : > { %v2188_v53 = vand.u32 65535, %v2184_v50  ;;  %v2189_v54 = vshrl.u32 %v2184_v50, 16  ;;  %v2304_v2 = vsel %vm2303_vm7, %v2302_v57, 0  ;;  %v2176_v38 = vsel %vm2170_vm6, %v2173_v11, %v2175_v12  ;;  %v3311_v57 = vpop.f32.mrf.mxu2 }
 0x133   : > { %v2213_v1 = vmul.u32 %v2211_v55, %v2186_v52  ;;  %v2306_v5 = vand.u32 31, %v2304_v2  ;;  %v2214_v14 = vmul.u32 %v2210_v62, %v2187_v58  ;;  %v2212_v20 = vmul.u32 %v2210_v62, %v2186_v52 }
 0x134   : > { %v2191_v59 = vmul.u32 %v2189_v54, %v2186_v52  ;;  %v2190_v61 = vmul.u32 %v2188_v53, %v2186_v52  ;;  %v2192_v3 = vmul.u32 %v2188_v53, %v2187_v58  ;;  %v2193_v7 = vmul.u32 %v2189_v54, %v2187_v58 }
 0x135   : > { %v2216_v16 = vshll.u32 %v2213_v1, 16  ;;  %v2215_v22 = vmul.u32 %v2211_v55, %v2187_v58  ;;  %v3281_v23 = vsub.s32 32, %v2306_v5  ;;  %v2218_v31 = vshll.u32 %v2214_v14, 16 }
 0x136   : > { %v2194_v63 = vshll.u32 %v2191_v59, 16  ;;  %v2196_v10 = vshll.u32 %v2192_v3, 16  ;;  %v2195_v26 = vshrl.u32 %v2191_v59, 16  ;;  %v2197_v35 = vshrl.u32 %v2192_v3, 16 }
 0x137   : > { %vm2220_vm10 = vc.u32 %v2212_v20, %v2216_v16  ;;  %v2222_v32 = vadd.s32 %v2216_v16, %v2212_v20  ;;  %v3289_v39 = vshrl.u32 %v2304_v2, 5  ;;  %v2217_v41 = vshrl.u32 %v2213_v1, 16 }
 0x138   : > { %vm2198_vm8 = vc.u32 %v2190_v61, %v2194_v63  ;;  %v2200_v9 = vadd.s32 %v2194_v63, %v2190_v61  ;;  %v2221_v34 = vsel %vm2220_vm10, 1, %v3017_v56  ;;  %v2299_v46 = vand.u32 8388607, %v2292_v6 }
 0x139   : > { %v2199_v13 = vsel %vm2198_vm8, 1, %v3017_v56  ;;  %v2223_v37 = vadd.s32 %v2221_v34, %v2215_v22  ;;  %vm2224_vm11 = vc.u32 %v2222_v32, %v2218_v31  ;;  %v2310_v47 = vshrl.u32 %v3020_v21, %v3281_v23 }
 0x13a   : > { %v2201_v17 = vadd.s32 %v2199_v13, %v2193_v7  ;;  %vm2202_vm9 = vc.u32 %v2200_v9, %v2196_v10  ;;  %v2225_v42 = vsel %vm2224_vm11, 1, %v3017_v56  ;;  %v2309_v18 = vshll.u32 %v3019_v19, %v2306_v5  ;;  %v3343_v10 = vpop.f32.mrf.mxu1 }
 0x13b   : > { %v2203_v28 = vsel %vm2202_vm9, 1, %v3017_v56  ;;  %v2227_v45 = vadd.s32 %v2225_v42, %v2223_v37  ;;  %v2312_v49 = vshll.u32 %v3020_v21, %v2306_v5  ;;  %v2313_v50 = vshrl.u32 %v3021_v24, %v3281_v23 }
 0x13c   : > { %v2205_v29 = vadd.s32 %v2203_v28, %v2201_v17  ;;  %v2316_v51 = vshrl.u32 %v3022_v27, %v3281_v23  ;;  %v2219_v52 = vshrl.u32 %v2214_v14, 16  ;;  %v3308_v53 = vadd.s32 %v2222_v32, %v2218_v31  ;;  %v3355_v17 = vpop.f32.mrf.mxu3  ;;  %v3361_v28 = vpop.f32.mrf.mxu2 }
 0x13d   : > { %v2228_v54 = vadd.s32 %v2227_v45, %v2217_v41  ;;  %v2315_v55 = vshll.u32 %v3021_v24, %v2306_v5  ;;  %v3313_v58 = vor.u32 %v2310_v47, %v2309_v18  ;;  %v3315_v59 = vor.u32 %v2313_v50, %v2312_v49  ;;  %v3325_v24 = vpop.f32.mrf.mxu0 }
 0x13e   : > { %v2206_v36 = vadd.s32 %v2205_v29, %v2195_v26  ;;  %v2318_v21 = vshll.u32 %v3022_v27, %v2306_v5  ;;  %v2319_v60 = vshrl.u32 %v3023_v30, %v3281_v23  ;;  %v2321_v63 = vshll.u32 %v3023_v30, %v2306_v5 }
 0x13f   : > { %v2229_v61 = vadd.s32 %v2228_v54, %v2219_v52  ;;  %v3320_v62 = vor.u32 %v2316_v51, %v2315_v55  ;;  %v2322_v1 = vshrl.u32 %v3024_v33, %v3281_v23  ;;  %v2300_v2 = vor.u32 8388608, %v2299_v46 }
 0x140   : > { %v3294_v44 = vadd.s32 %v2206_v36, %v2197_v35  ;;  %v2320_v3 = vor.u32 %v2319_v60, %v2318_v21  ;;  %vm2324_vm13 = vcmp.lt.s32.totalorder %v3289_v39, 1  ;;  %vm2327_vm14 = vcmp.lt.s32.totalorder %v3289_v39, 4 }
 0x141   : > { %v2233_v4 = vadd.s32 1, %v2229_v61  ;;  %v2323_v27 = vor.u32 %v2322_v1, %v2321_v63  ;;  %v2230_v7 = vmul.u32 %v3254_v43, %v2176_v38  ;;  %vm2326_vm15 = vcmp.lt.s32.totalorder %v3289_v39, 3 }
 0x142   : > { %vm2232_vm12 = vc.u32 %v3294_v44, %v3308_v53  ;;  %v2332_v30 = vsel %vm2324_vm13, %v3313_v58, %v3315_v59  ;;  %v2333_v33 = vsel %vm2327_vm14, %v2320_v3, 920167782  ;;  %vm2325_vm0 = vcmp.lt.s32.totalorder %v3289_v39, 2  ;;  %v3370_v49 = vpop.f32.mrf.mxu1 }
 0x143   : > { %v2234_v5 = vsel %vm2232_vm12, %v2233_v4, %v2229_v61  ;;  %v2334_v9 = vsel %vm2326_vm15, %v3320_v62, %v2333_v33  ;;  %v2336_v12 = vsel %vm2324_vm13, %v3315_v59, %v3320_v62  ;;  %v2337_v13 = vsel %vm2327_vm14, %v2323_v27, 1326507024 }
 0x144   : > { %v2235_v43 = vadd.s32 %v2234_v5, %v2230_v7  ;;  %v2335_v11 = vsel %vm2325_vm0, %v2332_v30, %v2334_v9  ;;  %v3353_v14 = vshll.u32 %v2300_v2, 8  ;;  %v2338_v16 = vsel %vm2326_vm15, %v2320_v3, %v2337_v13  ;;  %v3373_v21 = vpop.f32.mrf.mxu3  ;;  %v3375_v3 = vpop.f32.mrf.mxu2 }
 0x145   : > { %v2339_v22 = vsel %vm2325_vm0, %v2336_v12, %v2338_v16  ;;  %v2366_v26 = vshrl.u32 %v2335_v11, 16  ;;  %v3367_v36 = vpop.f32.mrf.mxu0  ;;  %v2365_v42 = vand.u32 65535, %v2335_v11  ;;  %vm2139_vm8 = vcmp.lt.s32.totalorder %v3226_v0, 0 }
 0x146   : > { %v2236_v20 = vadd.s32 536870912, %v2235_v43  ;;  %v2341_v31 = vand.u32 65535, %v3353_v14  ;;  %v2343_v32 = vand.u32 65535, %v2339_v22  ;;  %v2344_v34 = vshrl.u32 %v2339_v22, 16 }
 0x147   : > { %v2342_v35 = vshrl.u32 %v3353_v14, 16  ;;  %v2231_v22 = vadd.s32 %v3308_v53, %v3294_v44  ;;  %vm3415_vm9 = vcmp.le.f32.partialorder %v2137_v8, 0.7853982  ;;  %vm2294_vm12 = vcmp.lt.s32.totalorder %v3232_v15, 0 }
 0x148   : > { %v3363_v29 = vshrl.u32 %v2236_v20, 30  ;;  %v2346_v38 = vmul.u32 %v2344_v34, %v2341_v31  ;;  %v2345_v46 = vmul.u32 %v2343_v32, %v2341_v31  ;;  %v2368_v18 = vmul.u32 %v2366_v26, %v2341_v31 }
 0x149   : > { %v2347_v41 = vmul.u32 %v2343_v32, %v2342_v35  ;;  %v2348_v51 = vmul.u32 %v2344_v34, %v2342_v35  ;;  %v2369_v63 = vmul.u32 %v2365_v42, %v2342_v35  ;;  %v2367_v27 = vmul.u32 %v2365_v42, %v2341_v31 }
 0x14a   : > { %v2238_v37 = vshll.u32 %v3363_v29, 30  ;;  %v2349_v47 = vshll.u32 %v2346_v38, 16  ;;  %v2371_v1 = vshll.u32 %v2368_v18, 16  ;;  %v2370_v33 = vmul.u32 %v2366_v26, %v2342_v35  ;;  %v3386_v34 = vpop.f32.mrf.mxu1 }
 0x14b   : > { %v2351_v52 = vshll.u32 %v2347_v41, 16  ;;  %v2350_v9 = vshrl.u32 %v2346_v38, 16  ;;  %v2329_v26 = vsel %vm2327_vm14, %v3320_v62, 2102212464  ;;  %v2308_v35 = vshrl.u32 %v3019_v19, %v3281_v23 }
 0x14c   : > { %v2239_v45 = vsub.s32 %v2235_v43, %v2238_v37  ;;  %vm2353_vm2 = vc.u32 %v2345_v46, %v2349_v47  ;;  %v2355_v55 = vadd.s32 %v2349_v47, %v2345_v46  ;;  %v2373_v43 = vshll.u32 %v2369_v63, 16  ;;  %v3391_v44 = vpop.f32.mrf.mxu3 }
 0x14d   : > { %v2354_v54 = vsel %vm2353_vm2, 1, %v3017_v56  ;;  %v3378_v5 = vpop.f32.mrf.mxu0  ;;  %vm2375_vm4 = vc.u32 %v2367_v27, %v2371_v1  ;;  %v2377_v11 = vadd.s32 %v2371_v1, %v2367_v27  ;;  %v2352_v37 = vshrl.u32 %v2347_v41, 16 }
 0x14e   : > { %vm2240_vm1 = vcmp.lt.s32.totalorder %v2239_v45, 0  ;;  %v2241_v50 = vsub.s32 0, %v2239_v45  ;;  %v2356_v61 = vadd.s32 %v2354_v54, %v2348_v51  ;;  %vm2357_vm3 = vc.u32 %v2355_v55, %v2351_v52 }
 0x14f   : > { %v2358_v4 = vsel %vm2357_vm3, 1, %v3017_v56  ;;  %v2376_v12 = vsel %vm2375_vm4, 1, %v3017_v56  ;;  %vm2379_vm6 = vc.u32 %v2377_v11, %v2373_v43  ;;  %v2372_v38 = vshrl.u32 %v2368_v18, 16 }
 0x150   : > { %v2242_v60 = vsel %vm2240_vm1, %v2241_v50, %v2239_v45  ;;  %v2360_v30 = vadd.s32 %v2358_v4, %v2356_v61  ;;  %v2378_v16 = vadd.s32 %v2376_v12, %v2370_v33  ;;  %v2380_v42 = vsel %vm2379_vm6, 1, %v3017_v56  ;;  %v3399_v56 = vpop.f32.mrf.mxu2 }
 0x151   : > { %v2243_v2 = vclz %v2242_v60  ;;  %v2328_v53 = vsel %vm2324_vm13, %v2308_v35, %v3313_v58  ;;  %v2330_v62 = vsel %vm2326_vm15, %v3315_v59, %v2329_v26  ;;  %v2374_v41 = vshrl.u32 %v2369_v63, 16 }
 0x152   : > { %v2361_v20 = vadd.s32 %v2360_v30, %v2350_v9  ;;  %v2382_v51 = vadd.s32 %v2380_v42, %v2378_v16  ;;  %v2331_v55 = vsel %vm2325_vm0, %v2328_v53, %v2330_v62  ;;  %v3406_v63 = vpop.f32.mrf.mxu1  ;;  %v1290_v9 = vadd.f32 %v3291_v40, %v3283_v25 }
 0x153   : > { %v2643_v7 = vadd.s32 4294967294, %v2243_v2  ;;  %v2385_v59 = vmul.u32 %v3353_v14, %v2331_v55  ;;  %vm3460_vm13 = vcmp.le.f32.partialorder %v2292_v6, 0.7853982  ;;  %vm2280_vm1 = vweird.f32 %v3226_v0 }
 0x154   : > { %v2362_v52 = vadd.s32 %v2361_v20, %v2352_v37  ;;  %v2383_v18 = vadd.s32 %v2382_v51, %v2372_v38  ;;  %v3409_v33 = vpop.f32.mrf.mxu3  ;;  %v1314_v8 = vadd.f32 %v3311_v57, %v1290_v9  ;;  %vm2476_vm2 = vcmask 7168  }
 0x155   : > { %vm2644_vm5 = vcmp.lt.s32.totalorder %v2643_v7, 0  ;;  %v3403_v61 = vpop.f32.mrf.mxu0  ;;  %vm2435_vm6 = vweird.f32 %v3232_v15 }
 0x156   : > { %v2246_v13 = vsel %vm2644_vm5, 0, %v2643_v7  ;;  %v2384_v60 = vadd.s32 %v2383_v18, %v2374_v41  ;;  %v1338_v35 = vadd.f32 %v3300_v48, %v1314_v8 }
 0x157   : > { %v2247_v31 = vsub.s32 32, %v2246_v13  ;;  %v2251_v32 = vsub.s32 4294967266, %v2246_v13  ;;  %v2248_v46 = vshll.u32 %v2239_v45, %v2246_v13  ;;  %v2381_v45 = vadd.s32 %v2377_v11, %v2373_v43 }
 0x158   : > { %v2388_v2 = vadd.s32 1, %v2384_v60  ;;  %v3421_v11 = vpop.f32.mrf.mxu2  ;;  %v1362_v51 = vadd.f32 %v3325_v24, %v1338_v35 }
 0x159   : > { %v2249_v47 = vshrl.u32 %v2231_v22, %v2247_v31  ;;  %v2252_v50 = vadd.s32 127, %v2251_v32  ;;  %vm2387_vm7 = vc.u32 %v2362_v52, %v2381_v45  ;;  %v2386_v55 = vadd.s32 %v2381_v45, %v2362_v52 }
 0x15a   : > { %v2389_v27 = vsel %vm2387_vm7, %v2388_v2, %v2384_v60  ;;  %v3432_v31 = vpop.f32.mrf.mxu1  ;;  %v1384_v18 = vadd.f32 %v3343_v10, %v1362_v51  ;;  %vm2464_vm7 = vcmask 1040384  }
 0x15b   : > { %v2250_v19 = vor.u32 %v2249_v47, %v2248_v46  ;;  %v2253_v23 = vshll.u32 %v2252_v50, 23  ;;  %v2390_v7 = vadd.s32 %v2389_v27, %v2385_v59  ;;  %v1436_v46 = vadd.f32 %v3355_v17, %v3361_v28 }
 0x15c   : > { %v3435_v37 = vpop.f32.mrf.mxu3 }
 0x15d   : > { %v2254_v54 = vor.u32 4788187, %v2253_v23  ;;  %v2257_v1 = vcvt.s32.f32 %v2250_v19  ;;  %v2391_v39 = vadd.s32 536870912, %v2390_v7  ;;  %v3428_v16 = vpop.f32.mrf.mxu0  ;;  %v1460_v23 = vadd.f32 %v3367_v36, %v1436_v46 }
 0x15e   : > { %v1559_v36 = vadd.f32 %v3378_v5, %v1384_v18 }
 0x15f   : > { %v2255_v58 = vand.u32 2147483647, %v2254_v54  ;;  %v3426_v13 = vshrl.u32 %v2391_v39, 30  ;;  %v2261_v54 = vsub.s32 4, %v3363_v29 }
 0x160   : > { %v3439_v50 = vpop.f32.mrf.mxu2 }
 0x161   : > { %v2258_v4 = vmul.f32 %v2257_v1, %v2255_v58  ;;  %v2393_v25 = vshll.u32 %v3426_v13, 30  ;;  %v1484_v1 = vadd.f32 %v3370_v49, %v1460_v23  ;;  %v2262_v10 = vsel %vm2139_vm8, %v2261_v54, %v3363_v29 }
 0x162   : > { %v1884_v28 = vpop.f32.mrf.mxu1  ;;  %v2264_v49 = vsel %vm3415_vm9, 0, %v2262_v10 }
 0x163   : > { %v2259_v30 = vxor.u32 2147483648, %v2258_v4  ;;  %v2394_v22 = vsub.s32 %v2390_v7, %v2393_v25  ;;  %v1508_v39 = vadd.f32 %v3375_v3, %v1484_v1  ;;  %v2281_v35 = vadd.s32 3, %v2264_v49 }
 0x164   : > { %v1932_v2 = vpop.f32.mrf.mxu3 }
 0x165   : > { %v2260_v14 = vsel %vm2139_vm8, %v2259_v30, %v2258_v4  ;;  %vm2395_vm10 = vcmp.lt.s32.totalorder %v2394_v22, 0  ;;  %v2396_v26 = vsub.s32 0, %v2394_v22  ;;  %v1858_v62 = vpop.f32.mrf.mxu0  ;;  %v1530_v29 = vadd.f32 %v3373_v21, %v1508_v39 }
 0x166   : > { %v2263_v12 = vsel %vm3415_vm9, %v3226_v0, %v2260_v14  ;;  %v1885_v9 = vadd.f32 %v1884_v28, %v1858_v62  ;;  %v2282_v62 = vand.u32 3, %v2281_v35 }
 0x167   : > { %v2265_v20 = vmul.f32 %v2263_v12, %v2263_v12  ;;  %v2397_v42 = vsel %vm2395_vm10, %v2396_v26, %v2394_v22  ;;  %v1705_v51 = vadd.f32 %v3421_v11, %v1530_v29  ;;  %v2416_v11 = vsub.s32 4, %v3426_v13 }
 0x168   : > { %v2398_v47 = vclz %v2397_v42  ;;  %v1908_v7 = vpop.f32.mrf.mxu2  ;;  %vm2284_vm14 = vcmp.eq.s32.totalorder %v2282_v62, 0  ;;  %vm2287_vm15 = vcmp.eq.s32.totalorder %v2282_v62, 2  ;;  %vm2283_vm0 = vcmp.lt.s32.totalorder %v2282_v62, 2 }
 0x169   : > { %v2273_v40 = vmul.f32 -0.00019511016, %v2265_v20  ;;  %v2266_v38 = vmul.f32 -0.001358992, %v2265_v20  ;;  %v1909_v26 = vadd.f32 %v1908_v7, %v1885_v9  ;;  %v1731_v6 = vadd.f32 %v3409_v33, %v1705_v51 }
 0x16a   : > { %v2646_v53 = vadd.s32 4294967294, %v2398_v47 }
 0x16b   : > { %v2274_v32 = vadd.f32 0.008332121, %v2273_v40  ;;  %v2267_v19 = vadd.f32 0.041655596, %v2266_v38  ;;  %v1585_v40 = vadd.f32 %v3386_v34, %v1559_v36  ;;  %v1978_v38 = vpop.f32.mrf.mxu1  ;;  %v1755_v33 = vadd.f32 %v3428_v16, %v1731_v6 }
 0x16c   : > { %vm2647_vm11 = vcmp.lt.s32.totalorder %v2646_v53, 0 }
 0x16d   : > { %v2275_v57 = vmul.f32 %v2274_v32, %v2265_v20  ;;  %v2401_v41 = vsel %vm2647_vm11, 0, %v2646_v53  ;;  %v2268_v60 = vmul.f32 %v2267_v19, %v2265_v20  ;;  %v1956_v14 = vpop.f32.mrf.mxu0  ;;  %v1609_v3 = vadd.f32 %v3399_v56, %v1585_v40 }
 0x16e   : > { %v2402_v17 = vsub.s32 32, %v2401_v41  ;;  %v2406_v58 = vsub.s32 4294967266, %v2401_v41  ;;  %v2403_v4 = vshll.u32 %v2394_v22, %v2401_v41  ;;  %v1933_v53 = vadd.f32 %v1932_v2, %v1909_v26 }
 0x16f   : > { %v2276_v48 = vadd.f32 -0.16666654, %v2275_v57  ;;  %v2269_v30 = vadd.f32 -0.4999988, %v2268_v60  ;;  %v2030_v57 = vpop.f32.mrf.mxu3  ;;  %v1779_v9 = vadd.f32 %v3432_v31, %v1755_v33 }
 0x170   : > { %v2404_v24 = vshrl.u32 %v2386_v55, %v2402_v17  ;;  %v2407_v27 = vadd.s32 127, %v2406_v58  ;;  %v1957_v54 = vadd.f32 %v1956_v14, %v1933_v53  ;;  %v2417_v58 = vsel %vm2294_vm12, %v2416_v11, %v3426_v13 }
 0x171   : > { %v2277_v59 = vmul.f32 %v2276_v48, %v2265_v20  ;;  %v2270_v5 = vmul.f32 %v2269_v30, %v2265_v20  ;;  %v2004_v20 = vpop.f32.mrf.mxu2  ;;  %v2419_v36 = vsel %vm3460_vm13, 0, %v2417_v58 }
 0x172   : > { %v2405_v52 = vor.u32 %v2404_v24, %v2403_v4  ;;  %v2408_v45 = vshll.u32 %v2407_v27, 23  ;;  %v2031_v19 = vadd.f32 %v2030_v57, %v2004_v20  ;;  %v1979_v4 = vadd.f32 %v1978_v38, %v1957_v54 }
 0x173   : > { %v2278_v25 = vadd.f32 1.0, %v2277_v59  ;;  %v2271_v47 = vadd.f32 1.0, %v2270_v5  ;;  %v2078_v24 = vpop.f32.mrf.mxu1  ;;  %v2436_v16 = vadd.s32 3, %v2419_v36 }
 0x174   : > { %v2409_v8 = vor.u32 4788187, %v2408_v45  ;;  %v2412_v32 = vcvt.s32.f32 %v2405_v52 }
 0x175   : > { %v2279_v42 = vmul.f32 %v2278_v25, %v2263_v12  ;;  %v1633_v12 = vadd.f32 %v3391_v44, %v1609_v3  ;;  %v2288_v48 = vxor.u32 2147483648, %v2271_v47  ;;  %v2054_v41 = vpop.f32.mrf.mxu0  ;;  %v2437_v29 = vand.u32 3, %v2436_v16 }
 0x176   : > { %v2410_v22 = vand.u32 2147483647, %v2409_v8  ;;  %v2055_v44 = vadd.f32 %v2054_v41, %v2031_v19  ;;  %v2467_v19 = vlaneseq }
 0x177   : > { %v2285_v34 = vxor.u32 2147483648, %v2279_v42  ;;  %v1657_v60 = vadd.f32 %v3403_v61, %v1633_v12  ;;  %v2289_v1 = vsel %vm2287_vm15, %v2288_v48, %v2279_v42  ;;  %v2124_v5 = vpop.f32.mrf.mxu3  ;;  %vm2439_vm3 = vcmp.eq.s32.totalorder %v2437_v29, 0 }
 0x178   : > { %v2413_v46 = vmul.f32 %v2412_v32, %v2410_v22  ;;  %v2079_v30 = vadd.f32 %v2078_v24, %v2055_v44  ;;  %vm2442_vm4 = vcmp.eq.s32.totalorder %v2437_v29, 2  ;;  %vm2438_vm5 = vcmp.lt.s32.totalorder %v2437_v29, 2 }
 0x179   : > { %v2286_v55 = vsel %vm2284_vm14, %v2271_v47, %v2285_v34  ;;  %v1679_v7 = vadd.f32 %v3406_v63, %v1657_v60  ;;  %v2102_v52 = vpop.f32.mrf.mxu2  ;;  %v1803_v63 = vadd.f32 %v3439_v50, %v1779_v9  ;;  %vm2469_vm8 = vcmp.lt.s32.totalorder %v2467_v19, 256 }
 0x17a   : > { %v2414_v43 = vxor.u32 2147483648, %v2413_v46  ;;  %v2290_v27 = vsel %vm2283_vm0, %v2286_v55, %v2289_v1  ;;  %v2103_v40 = vadd.f32 %v2102_v52, %v2079_v30 }
 0x17b   : > { %v2291_v13 = vsel %vm2280_vm1, nan, %v2290_v27  ;;  %v2127_v14 = vadd.f32 %v1979_v4, %v1679_v7  ;;  %v1825_v31 = vadd.f32 %v3435_v37, %v1803_v63 }
 0x17c   : > { %v2415_v56 = vsel %vm2294_vm12, %v2414_v43, %v2413_v46  ;;  %v2125_v38 = vadd.f32 %v2124_v5, %v2103_v40 }
 0x17d   : > { %v2418_v23 = vsel %vm3460_vm13, %v3232_v15, %v2415_v56  ;;  %v2447_v8 = vmul.f32 %v2291_v13, %v2127_v14 }
 0x17e   : > { %v2420_v18 = vmul.f32 %v2418_v23, %v2418_v23  ;;  %v2128_v50 = vadd.f32 %v2125_v38, %v1825_v31 }
 0x17f   : > { %v2449_v35 = vrot.slane %v2447_v8, 4 }
 0x180   : > { %v2421_v17 = vmul.f32 -0.001358992, %v2420_v18  ;;  %v2428_v28 = vmul.f32 -0.00019511016, %v2420_v18 }
 0x181   : > { %v2450_v57 = vadd.f32 %v2449_v35, %v2447_v8 }
 0x182   : > { %v2422_v2 = vadd.f32 0.041655596, %v2421_v17  ;;  %v2429_v59 = vadd.f32 0.008332121, %v2428_v28 }
 0x183   : > { %v2451_v62 = vrot.slane %v2450_v57, 2 }
 0x184   : > { %v2423_v10 = vmul.f32 %v2422_v2, %v2420_v18  ;;  %v2430_v61 = vmul.f32 %v2429_v59, %v2420_v18 }
 0x185   : > { %v2452_v21 = vadd.f32 %v2451_v62, %v2450_v57 }
 0x186   : > { %v2424_v45 = vadd.f32 -0.4999988, %v2423_v10  ;;  %v2431_v39 = vadd.f32 -0.16666654, %v2430_v61 }
 0x187   : > { %v2453_v15 = vrot.slane %v2452_v21, 1 }
 0x188   : > { %v2425_v49 = vmul.f32 %v2424_v45, %v2420_v18  ;;  %v2432_v25 = vmul.f32 %v2431_v39, %v2420_v18 }
 0x18a   : > { %v2426_v22 = vadd.f32 1.0, %v2425_v49  ;;  %v2433_v32 = vadd.f32 1.0, %v2432_v25 }
 0x18c   : > { %v2434_v0 = vmul.f32 %v2433_v32, %v2418_v23  ;;  %v2443_v26 = vxor.u32 2147483648, %v2426_v22  ;;  %v2454_v23 = vadd.f32 %v2453_v15, %v2452_v21 }
 0x18e   : > { %v2440_v46 = vxor.u32 2147483648, %v2434_v0  ;;  %v2444_v47 = vsel %vm2442_vm4, %v2443_v26, %v2434_v0 }
 0x190   : > { %v2441_v3 = vsel %vm2439_vm3, %v2426_v22, %v2440_v46 }
 0x191   : > { %v2445_v43 = vsel %vm2438_vm5, %v2441_v3, %v2444_v47 }
 0x192   : > { %v2446_v51 = vsel %vm2435_vm6, nan, %v2445_v43 }
 0x193   : > { %v2448_v53 = vmul.f32 %v2446_v51, %v2128_v50 }
 0x195   : > { %v2455_v34 = vrot.slane %v2448_v53, 4 }
 0x197   : > { %v2456_v20 = vadd.f32 %v2455_v34, %v2448_v53 }
 0x199   : > { %v2457_v37 = vrot.slane %v2456_v20, 2 }
 0x19a   : > { %v2474_v42 = vpop.permute.xlu0 %2473 }
 0x19b   : > { %2477 = vst.msk [vmem:[#allocation2] sm:$0xff] %vm2476_vm2, %v2474_v42  ;;  %v2458_v56 = vadd.f32 %v2457_v37, %v2456_v20 }
 0x19d   : > { %v2459_v12 = vrot.slane %v2458_v56, 1 }
 0x19f   : > { %v2460_v11 = vadd.f32 %v2459_v12, %v2458_v56 }
 0x1a1   : > { %v2463_v48 = vrot.slane %v2460_v11, 7 }
 0x1a3   : > { %v2465_v41 = vsel %vm2464_vm7, %v2454_v23, %v2463_v48 }
 0x1a4   : > { %2471 = vst.msk [vmem:[%s3204_s28] sm:$0x3] %vm2469_vm8, %v2465_v41 }
 0x1a5   : > { %2924 = shalt.err (!%p2921_p0)
}
 0x1a6   : > { %2670 = dma.vmem_to_hbm [thread:$0]  (%p3141_p5), %s2494_s15, 32, %s2496_s29, %s2479_s18  }
 0x1a7 PF: > { %s3564_s6 = sld [smem:[#allocation17_spill]]  ;;  %p2695_p3 = scmp.ge.s32.totalorder %s3007_s22, 2 }
 0x1a9   : > { %p2687_p7 = pnand %p2695_p3, %p3105_p6 }
 0x1ab   : > { %p2688_p9 = pneg %p2687_p7 }
 0x1ad   : > { %s2507_s24 = sand.u32 1, %s3564_s6  }
 0x1ae   : > { %s2508_s7 = scalar_lea.sflag [#allocation5], %s2507_s24 }
 0x1af   : > { %2974 = dma.done.wait (%p2688_p9), %s2508_s7, 32  }
 0x1b0   : > { %2976 = vsyncadd (%p2688_p9), %s2508_s7, 4294967264  ;;  %s24_s22 = sadd.s32 1, %s3007_s22   ;;  %s3566_s28 = sld [smem:[#allocation19_spill]] }
 0x1b1   : > { %p21_p2 = scmp.ge.s32.totalorder %s24_s22, 10   ;;  %s3567_s23 = sld [smem:[#allocation21_spill]] }
 0x1b2   : > { %s3568_s15 = smov %s2983_s16  ;;  %s3569_s16 = smov %s2987_s17 }
 0x1b3   : > { %s3570_s17 = smov %s3154_s3  ;;  %s3571_s18 = smov %s2999_s20 }
 0x1b4   : > { %s3572_s19 = smov %s3003_s21  ;;  %23 = sbr.rel (!%p21_p2) target bundleno = 14 (0xe), region = 114 }
 0x1b6   : > { %s3573_s20 = smov %s3566_s28 }
 0x1b7   : > { %s3574_s21 = smov %s3567_s23 }
 0x1b9   :  { %2514 = vsyncpa [#allocation4], 1 }
 0x1ba   :  { %2516 = vsyncpa [#allocation4 + $0x1], 1 }
 0x1bb   :  { %2517 = vsyncpa [#allocation7], 1 }
 0x1bc   :  { %2519 = vsyncpa [#allocation7 + $0x1], 1 }
 0x1bd   :  { %2520 = vsyncpa [#allocation10], 1 }
 0x1be   :  { %2521 = vsyncpa [#allocation5], 1 }
 0x1bf   :  { %2523 = vsyncpa [#allocation5 + $0x1], 1 }

</bundles_post_ra>
